<compile_context>
chip_gen: v7x
topology: tpu7x:2x2x1
jax: 0.10.0
libtpu: 0.0.40
codegen_flags: <defaults>
</compile_context>

<pallas_src>
import math

import jax
import jax.numpy as jnp
from jax.experimental import pallas as pl
from jax.experimental.pallas import tpu as pltpu


def make_encoder_layer(d_model, num_heads, ff_dim, seq_len, batch, block_q=None):
    head_dim = d_model // num_heads
    assert head_dim * num_heads == d_model, "d_model must be divisible by num_heads"
    if block_q is None:
        block_q = seq_len if seq_len <= 256 else 256
    assert seq_len % block_q == 0, "seq_len must be divisible by block_q"
    n_q = seq_len // block_q

    scale = 1.0 / math.sqrt(head_dim)
    eps = 1e-5          # PyTorch LayerNorm default
    inv_d = 1.0 / d_model

    def layernorm(z, gamma, beta):
        # One-pass stats: sum and sum-of-squares (biased variance, like torch).
        s1 = jnp.sum(z, axis=-1, keepdims=True)
        s2 = jnp.sum(z * z, axis=-1, keepdims=True)
        mu = s1 * inv_d
        var = s2 * inv_d - mu * mu
        inv = jax.lax.rsqrt(var + eps)
        return (z - mu) * inv * gamma + beta

    def kernel(xq_ref, xkv_ref,
               wq_ref, bq_ref, wk_ref, bk_ref, wv_ref, bv_ref, wo_ref, bo_ref,
               g1_ref, be1_ref,
               wf1_ref, bf1_ref, wf2_ref, bf2_ref,
               g2_ref, be2_ref,
               out_ref):
        xq = xq_ref[...]                      # (tq, D) f32  -- query rows
        xkv = xkv_ref[...]                    # (S,  D) f32  -- key/value rows
        xq_b = xq.astype(jnp.bfloat16)
        xkv_b = xkv.astype(jnp.bfloat16)

        # --- projections (bf16 MXU matmuls, f32 accumulation) ---
        q = jnp.dot(xq_b, wq_ref[...], preferred_element_type=jnp.float32) + bq_ref[...]
        k = jnp.dot(xkv_b, wk_ref[...], preferred_element_type=jnp.float32) + bk_ref[...]
        v = jnp.dot(xkv_b, wv_ref[...], preferred_element_type=jnp.float32) + bv_ref[...]

        q_b = (q * scale).astype(jnp.bfloat16)    # fold 1/sqrt(hd) into Q
        k_b = k.astype(jnp.bfloat16)
        v_b = v.astype(jnp.bfloat16)

        # --- per-head attention, accumulated directly through Wo (no concat) ---
        attn_out = jnp.zeros((block_q, d_model), jnp.float32) + bo_ref[...]
        for h in range(num_heads):
            lo = h * head_dim
            hi = lo + head_dim
            qh = q_b[:, lo:hi]                                   # (tq, hd)
            kh = k_b[:, lo:hi]                                   # (S,  hd)
            vh = v_b[:, lo:hi]                                   # (S,  hd)
            scores = jnp.dot(qh, kh.T, preferred_element_type=jnp.float32)  # (tq, S)
            m = jnp.max(scores, axis=-1, keepdims=True)
            e = jnp.exp(scores - m)
            p = e * pl.reciprocal(jnp.sum(e, axis=-1, keepdims=True), approx=True)
            ctx_h = jnp.dot(p.astype(jnp.bfloat16), vh,
                            preferred_element_type=jnp.float32)  # (tq, hd)
            attn_out = attn_out + jnp.dot(
                ctx_h.astype(jnp.bfloat16), wo_ref[lo:hi, :],
                preferred_element_type=jnp.float32)

        # --- Add & Norm 1 (dropout = identity in eval mode) ---
        h1 = layernorm(xq + attn_out, g1_ref[...], be1_ref[...])

        # --- Feed-forward (bf16 MXU matmuls) ---
        ff = jnp.maximum(
            jnp.dot(h1.astype(jnp.bfloat16), wf1_ref[...],
                    preferred_element_type=jnp.float32) + bf1_ref[...], 0.0)
        ff_out = jnp.dot(ff.astype(jnp.bfloat16), wf2_ref[...],
                         preferred_element_type=jnp.float32) + bf2_ref[...]

        # --- Add & Norm 2 ---
        out_ref[...] = layernorm(h1 + ff_out, g2_ref[...], be2_ref[...])

    def _const_spec(shape):
        n = len(shape)
        return pl.BlockSpec(shape, lambda b, q, _n=n: (0,) * _n)

    def forward(x, params):
        (wq, bq, wk, bk, wv, bv, wo, bo,
         g1, be1, wf1, bf1, wf2, bf2, g2, be2) = params

        # Weight matrices in bf16 (halves weight DMA + VMEM; MXU wants bf16).
        bf = lambda w: w.astype(jnp.bfloat16)
        kparams = (bf(wq), bq, bf(wk), bk, bf(wv), bv, bf(wo), bo,
                   g1, be1, bf(wf1), bf1, bf(wf2), bf2, g2, be2)

        in_specs = [
            # query tile; leading batch dim squeezed out of the kernel view
            pl.BlockSpec((None, block_q, d_model), lambda b, q: (b, q, 0)),
            # full sequence for K/V
            pl.BlockSpec((None, seq_len, d_model), lambda b, q: (b, 0, 0)),
        ]
        in_specs += [_const_spec(p.shape) for p in kparams]

        # Explicit VMEM budget: double-buffered blocks + resident params
        # + rough headroom for in-kernel intermediates.
        param_bytes = sum(int(p.size) * p.dtype.itemsize for p in kparams)
        block_bytes = (2 * block_q * d_model + seq_len * d_model) * 4
        interm_bytes = (3 * seq_len * d_model + num_heads * block_q * seq_len
                        + block_q * ff_dim + 6 * block_q * d_model) * 4
        vmem_limit = 2 * (param_bytes + block_bytes) + interm_bytes + (4 << 20)
        vmem_limit = int(min(max(vmem_limit, 32 << 20), 48 << 20))

        flops = batch * (
            2 * seq_len * d_model * d_model * 2              # Q proj + out proj
            + 2 * n_q * seq_len * d_model * d_model * 2      # K, V (per q-tile)
            + 4 * seq_len * seq_len * d_model                # scores + attn@V
            + 4 * seq_len * d_model * ff_dim)                # FFN
        cost = pl.CostEstimate(
            flops=int(flops),
            transcendentals=int(batch * num_heads * seq_len * seq_len),
            bytes_accessed=int(2 * x.size * 4 + param_bytes),
        )

        return pl.pallas_call(
            kernel,
            out_shape=jax.ShapeDtypeStruct((batch, seq_len, d_model), jnp.float32),
            grid_spec=pltpu.PrefetchScalarGridSpec(
                num_scalar_prefetch=0,
                grid=(batch, n_q),
                in_specs=in_specs,
                out_specs=pl.BlockSpec((None, block_q, d_model),
                                       lambda b, q: (b, q, 0)),
            ),
            compiler_params=pltpu.CompilerParams(
                dimension_semantics=("parallel", "parallel"),
                vmem_limit_bytes=vmem_limit),
            cost_estimate=cost,
        )(x, x, *kparams)

    return forward


def init_params(key, d_model, ff_dim):
    """Deterministic synthetic parameters. Linear weights are (in, out)."""
    ks = jax.random.split(key, 8)
    s = 0.1
    wq = jax.random.normal(ks[0], (d_model, d_model), jnp.float32) * s
    wk = jax.random.normal(ks[1], (d_model, d_model), jnp.float32) * s
    wv = jax.random.normal(ks[2], (d_model, d_model), jnp.float32) * s
    wo = jax.random.normal(ks[3], (d_model, d_model), jnp.float32) * s
    bq = jax.random.normal(ks[4], (1, d_model), jnp.float32) * s
    bk = jnp.zeros((1, d_model), jnp.float32)
    bv = jax.random.normal(ks[5], (1, d_model), jnp.float32) * s
    bo = jnp.zeros((1, d_model), jnp.float32)
    g1 = jnp.ones((1, d_model), jnp.float32)
    be1 = jnp.zeros((1, d_model), jnp.float32)
    wf1 = jax.random.normal(ks[6], (d_model, ff_dim), jnp.float32) * s
    bf1 = jnp.zeros((1, ff_dim), jnp.float32)
    wf2 = jax.random.normal(ks[7], (ff_dim, d_model), jnp.float32) * s
    bf2 = jnp.zeros((1, d_model), jnp.float32)
    g2 = jnp.ones((1, d_model), jnp.float32)
    be2 = jnp.zeros((1, d_model), jnp.float32)
    return (wq, bq, wk, bk, wv, bv, wo, bo,
            g1, be1, wf1, bf1, wf2, bf2, g2, be2)


def reference_forward(x, params, num_heads):
    """Pure-JAX f32 reference matching the PyTorch module (eval mode)."""
    (wq, bq, wk, bk, wv, bv, wo, bo,
     g1, be1, wf1, bf1, wf2, bf2, g2, be2) = params
    B, S, D = x.shape
    hd = D // num_heads
    eps = 1e-5

    def ln(z, g, b):
        mu = jnp.mean(z, axis=-1, keepdims=True)
        var = jnp.mean((z - mu) ** 2, axis=-1, keepdims=True)
        return (z - mu) / jnp.sqrt(var + eps) * g + b

    q = (x @ wq + bq).reshape(B, S, num_heads, hd).transpose(0, 2, 1, 3)
    k = (x @ wk + bk).reshape(B, S, num_heads, hd).transpose(0, 2, 1, 3)
    v = (x @ wv + bv).reshape(B, S, num_heads, hd).transpose(0, 2, 1, 3)
    scores = jnp.einsum("bhqd,bhkd->bhqk", q, k) / math.sqrt(hd)
    attn = jax.nn.softmax(scores, axis=-1)
    ctx = jnp.einsum("bhqk,bhkd->bhqd", attn, v).transpose(0, 2, 1, 3).reshape(B, S, D)
    attn_out = ctx @ wo + bo
    h1 = ln(x + attn_out, g1, be1)
    ff_out = jnp.maximum(h1 @ wf1 + bf1, 0.0) @ wf2 + bf2
    return ln(h1 + ff_out, g2, be2)


if __name__ == "__main__":
    B, S, D, H, F = 2, 8, 32, 4, 64

    key = jax.random.PRNGKey(0)
    kx, kp = jax.random.split(key)
    x = jax.random.normal(kx, (B, S, D), jnp.float32)
    params = init_params(kp, D, F)

    fwd = make_encoder_layer(d_model=D, num_heads=H, ff_dim=F, seq_len=S, batch=B)
    out = jax.block_until_ready(fwd(x, params))

    ref = reference_forward(x, params, H)
    assert out.shape == (B, S, D)
    # Tolerance loosened for bf16 MXU matmuls + approx reciprocal (f32 reference).
    assert jnp.allclose(out, ref, atol=5e-2, rtol=5e-2), "mismatch vs reference"
    print("KERNEL_OK")
</pallas_src>

<mosaic_0001>
module attributes {stable_mosaic.version = 11 : i64} {
  func.func @kernel(%arg0: i32, %arg1: i32, %arg2: memref<1x8x32xf32, #tpu.memory_space<vmem>>, %arg3: memref<1x8x32xf32, #tpu.memory_space<vmem>>, %arg4: memref<32x32xbf16, #tpu.memory_space<vmem>>, %arg5: memref<1x32xf32, #tpu.memory_space<vmem>>, %arg6: memref<32x32xbf16, #tpu.memory_space<vmem>>, %arg7: memref<1x32xf32, #tpu.memory_space<vmem>>, %arg8: memref<32x32xbf16, #tpu.memory_space<vmem>>, %arg9: memref<1x32xf32, #tpu.memory_space<vmem>>, %arg10: memref<32x32xbf16, #tpu.memory_space<vmem>>, %arg11: memref<1x32xf32, #tpu.memory_space<vmem>>, %arg12: memref<1x32xf32, #tpu.memory_space<vmem>>, %arg13: memref<1x32xf32, #tpu.memory_space<vmem>>, %arg14: memref<32x64xbf16, #tpu.memory_space<vmem>>, %arg15: memref<1x64xf32, #tpu.memory_space<vmem>>, %arg16: memref<64x32xbf16, #tpu.memory_space<vmem>>, %arg17: memref<1x32xf32, #tpu.memory_space<vmem>>, %arg18: memref<1x32xf32, #tpu.memory_space<vmem>>, %arg19: memref<1x32xf32, #tpu.memory_space<vmem>>, %arg20: memref<1x8x32xf32, #tpu.memory_space<vmem>>) attributes {dimension_semantics = [#tpu.dimension_semantics<parallel>, #tpu.dimension_semantics<parallel>], iteration_bounds = array<i64: 2, 1>, scalar_prefetch = 0 : i64, scratch_operands = 0 : i64, tpu.core_type = #tpu.core_type<tc>, window_params = [{transform_indices = @transform_0, window_bounds = array<i64: 1, 8, 32>}, {transform_indices = @transform_1, window_bounds = array<i64: 1, 8, 32>}, {pipeline_mode = #tpu.pipeline_mode<synchronous>, transform_indices = @transform_2, window_bounds = array<i64: 32, 32>}, {pipeline_mode = #tpu.pipeline_mode<synchronous>, transform_indices = @transform_3, window_bounds = array<i64: 1, 32>}, {pipeline_mode = #tpu.pipeline_mode<synchronous>, transform_indices = @transform_4, window_bounds = array<i64: 32, 32>}, {pipeline_mode = #tpu.pipeline_mode<synchronous>, transform_indices = @transform_5, window_bounds = array<i64: 1, 32>}, {pipeline_mode = #tpu.pipeline_mode<synchronous>, transform_indices = @transform_6, window_bounds = array<i64: 32, 32>}, {pipeline_mode = #tpu.pipeline_mode<synchronous>, transform_indices = @transform_7, window_bounds = array<i64: 1, 32>}, {pipeline_mode = #tpu.pipeline_mode<synchronous>, transform_indices = @transform_8, window_bounds = array<i64: 32, 32>}, {pipeline_mode = #tpu.pipeline_mode<synchronous>, transform_indices = @transform_9, window_bounds = array<i64: 1, 32>}, {pipeline_mode = #tpu.pipeline_mode<synchronous>, transform_indices = @transform_10, window_bounds = array<i64: 1, 32>}, {pipeline_mode = #tpu.pipeline_mode<synchronous>, transform_indices = @transform_11, window_bounds = array<i64: 1, 32>}, {pipeline_mode = #tpu.pipeline_mode<synchronous>, transform_indices = @transform_12, window_bounds = array<i64: 32, 64>}, {pipeline_mode = #tpu.pipeline_mode<synchronous>, transform_indices = @transform_13, window_bounds = array<i64: 1, 64>}, {pipeline_mode = #tpu.pipeline_mode<synchronous>, transform_indices = @transform_14, window_bounds = array<i64: 64, 32>}, {pipeline_mode = #tpu.pipeline_mode<synchronous>, transform_indices = @transform_15, window_bounds = array<i64: 1, 32>}, {pipeline_mode = #tpu.pipeline_mode<synchronous>, transform_indices = @transform_16, window_bounds = array<i64: 1, 32>}, {pipeline_mode = #tpu.pipeline_mode<synchronous>, transform_indices = @transform_17, window_bounds = array<i64: 1, 32>}, {transform_indices = @transform_18, window_bounds = array<i64: 1, 8, 32>}]} {
    %c0 = arith.constant 0 : index
    %c0_0 = arith.constant 0 : index
    %c0_1 = arith.constant 0 : index
    %0 = vector.load %arg2[%c0, %c0_0, %c0_1] : memref<1x8x32xf32, #tpu.memory_space<vmem>>, vector<1x8x32xf32>
    %1 = vector.shape_cast %0 : vector<1x8x32xf32> to vector<8x32xf32>
    %c0_2 = arith.constant 0 : index
    %c0_3 = arith.constant 0 : index
    %c0_4 = arith.constant 0 : index
    %2 = vector.load %arg3[%c0_2, %c0_3, %c0_4] : memref<1x8x32xf32, #tpu.memory_space<vmem>>, vector<1x8x32xf32>
    %3 = vector.shape_cast %2 : vector<1x8x32xf32> to vector<8x32xf32>
    %4 = arith.truncf %1 : vector<8x32xf32> to vector<8x32xbf16>
    %5 = arith.truncf %3 : vector<8x32xf32> to vector<8x32xbf16>
    %c0_5 = arith.constant 0 : index
    %c0_6 = arith.constant 0 : index
    %6 = vector.load %arg4[%c0_5, %c0_6] : memref<32x32xbf16, #tpu.memory_space<vmem>>, vector<32x32xbf16>
    %cst = arith.constant dense<0.000000e+00> : vector<8x32xf32>
    %7 = tpu.matmul %4, %6, %cst {dimension_numbers = #tpu.dot_dimension_numbers<[1], [0], [0], [1], [0, 0, 1, 1], [], []>} : vector<8x32xbf16>, vector<32x32xbf16>, vector<8x32xf32> -> vector<8x32xf32>
    %c0_7 = arith.constant 0 : index
    %c0_8 = arith.constant 0 : index
    %8 = vector.load %arg5[%c0_7, %c0_8] : memref<1x32xf32, #tpu.memory_space<vmem>>, vector<1x32xf32>
    %9 = vector.broadcast %8 : vector<1x32xf32> to vector<8x32xf32>
    %10 = arith.addf %7, %9 : vector<8x32xf32>
    %c0_9 = arith.constant 0 : index
    %c0_10 = arith.constant 0 : index
    %11 = vector.load %arg6[%c0_9, %c0_10] : memref<32x32xbf16, #tpu.memory_space<vmem>>, vector<32x32xbf16>
    %cst_11 = arith.constant dense<0.000000e+00> : vector<8x32xf32>
    %12 = tpu.matmul %5, %11, %cst_11 {dimension_numbers = #tpu.dot_dimension_numbers<[1], [0], [0], [1], [0, 0, 1, 1], [], []>} : vector<8x32xbf16>, vector<32x32xbf16>, vector<8x32xf32> -> vector<8x32xf32>
    %c0_12 = arith.constant 0 : index
    %c0_13 = arith.constant 0 : index
    %13 = vector.load %arg7[%c0_12, %c0_13] : memref<1x32xf32, #tpu.memory_space<vmem>>, vector<1x32xf32>
    %14 = vector.broadcast %13 : vector<1x32xf32> to vector<8x32xf32>
    %15 = arith.addf %12, %14 : vector<8x32xf32>
    %c0_14 = arith.constant 0 : index
    %c0_15 = arith.constant 0 : index
    %16 = vector.load %arg8[%c0_14, %c0_15] : memref<32x32xbf16, #tpu.memory_space<vmem>>, vector<32x32xbf16>
    %cst_16 = arith.constant dense<0.000000e+00> : vector<8x32xf32>
    %17 = tpu.matmul %5, %16, %cst_16 {dimension_numbers = #tpu.dot_dimension_numbers<[1], [0], [0], [1], [0, 0, 1, 1], [], []>} : vector<8x32xbf16>, vector<32x32xbf16>, vector<8x32xf32> -> vector<8x32xf32>
    %c0_17 = arith.constant 0 : index
    %c0_18 = arith.constant 0 : index
    %18 = vector.load %arg9[%c0_17, %c0_18] : memref<1x32xf32, #tpu.memory_space<vmem>>, vector<1x32xf32>
    %19 = vector.broadcast %18 : vector<1x32xf32> to vector<8x32xf32>
    %20 = arith.addf %17, %19 : vector<8x32xf32>
    %cst_19 = arith.constant 0.353553385 : f32
    %21 = vector.broadcast %cst_19 : f32 to vector<8x32xf32>
    %22 = arith.mulf %10, %21 : vector<8x32xf32>
    %23 = arith.truncf %22 : vector<8x32xf32> to vector<8x32xbf16>
    %24 = arith.truncf %15 : vector<8x32xf32> to vector<8x32xbf16>
    %25 = arith.truncf %20 : vector<8x32xf32> to vector<8x32xbf16>
    %cst_20 = arith.constant 0.000000e+00 : f32
    %26 = vector.broadcast %cst_20 : f32 to vector<8x32xf32>
    %c0_21 = arith.constant 0 : index
    %c0_22 = arith.constant 0 : index
    %27 = vector.load %arg11[%c0_21, %c0_22] : memref<1x32xf32, #tpu.memory_space<vmem>>, vector<1x32xf32>
    %28 = vector.broadcast %27 : vector<1x32xf32> to vector<8x32xf32>
    %29 = arith.addf %26, %28 : vector<8x32xf32>
    %30 = vector.extract_strided_slice %23 {offsets = [0, 0], sizes = [8, 8], strides = [1, 1]} : vector<8x32xbf16> to vector<8x8xbf16>
    %31 = vector.extract_strided_slice %24 {offsets = [0, 0], sizes = [8, 8], strides = [1, 1]} : vector<8x32xbf16> to vector<8x8xbf16>
    %32 = vector.extract_strided_slice %25 {offsets = [0, 0], sizes = [8, 8], strides = [1, 1]} : vector<8x32xbf16> to vector<8x8xbf16>
    %33 = tpu.transpose %31, [1, 0] : vector<8x8xbf16> -> vector<8x8xbf16>
    %cst_23 = arith.constant dense<0.000000e+00> : vector<8x8xf32>
    %34 = tpu.matmul %30, %33, %cst_23 {dimension_numbers = #tpu.dot_dimension_numbers<[1], [0], [0], [1], [0, 0, 1, 1], [], []>} : vector<8x8xbf16>, vector<8x8xbf16>, vector<8x8xf32> -> vector<8x8xf32>
    %cst_24 = arith.constant dense<0xFF800000> : vector<8xf32>
    %35 = vector.multi_reduction <maximumf>, %34, %cst_24 [1] : vector<8x8xf32> to vector<8xf32>
    %36 = vector.shape_cast %35 : vector<8xf32> to vector<8x1xf32>
    %37 = vector.broadcast %36 : vector<8x1xf32> to vector<8x8xf32>
    %38 = arith.subf %34, %37 : vector<8x8xf32>
    %39 = math.exp %38 : vector<8x8xf32>
    %cst_25 = arith.constant dense<0.000000e+00> : vector<8xf32>
    %40 = vector.multi_reduction <add>, %39, %cst_25 [1] : vector<8x8xf32> to vector<8xf32>
    %41 = vector.shape_cast %40 : vector<8xf32> to vector<8x1xf32>
    %42 = tpu.reciprocal %41 {approx = true} : vector<8x1xf32> -> vector<8x1xf32>
    %43 = vector.broadcast %42 : vector<8x1xf32> to vector<8x8xf32>
    %44 = arith.mulf %39, %43 : vector<8x8xf32>
    %45 = arith.truncf %44 : vector<8x8xf32> to vector<8x8xbf16>
    %cst_26 = arith.constant dense<0.000000e+00> : vector<8x8xf32>
    %46 = tpu.matmul %45, %32, %cst_26 {dimension_numbers = #tpu.dot_dimension_numbers<[1], [0], [0], [1], [0, 0, 1, 1], [], []>} : vector<8x8xbf16>, vector<8x8xbf16>, vector<8x8xf32> -> vector<8x8xf32>
    %47 = arith.truncf %46 : vector<8x8xf32> to vector<8x8xbf16>
    %c0_27 = arith.constant 0 : index
    %c0_28 = arith.constant 0 : index
    %48 = vector.load %arg10[%c0_27, %c0_28] : memref<32x32xbf16, #tpu.memory_space<vmem>>, vector<8x32xbf16>
    %cst_29 = arith.constant dense<0.000000e+00> : vector<8x32xf32>
    %49 = tpu.matmul %47, %48, %cst_29 {dimension_numbers = #tpu.dot_dimension_numbers<[1], [0], [0], [1], [0, 0, 1, 1], [], []>} : vector<8x8xbf16>, vector<8x32xbf16>, vector<8x32xf32> -> vector<8x32xf32>
    %50 = arith.addf %29, %49 : vector<8x32xf32>
    %51 = vector.extract_strided_slice %23 {offsets = [0, 8], sizes = [8, 8], strides = [1, 1]} : vector<8x32xbf16> to vector<8x8xbf16>
    %52 = vector.extract_strided_slice %24 {offsets = [0, 8], sizes = [8, 8], strides = [1, 1]} : vector<8x32xbf16> to vector<8x8xbf16>
    %53 = vector.extract_strided_slice %25 {offsets = [0, 8], sizes = [8, 8], strides = [1, 1]} : vector<8x32xbf16> to vector<8x8xbf16>
    %54 = tpu.transpose %52, [1, 0] : vector<8x8xbf16> -> vector<8x8xbf16>
    %cst_30 = arith.constant dense<0.000000e+00> : vector<8x8xf32>
    %55 = tpu.matmul %51, %54, %cst_30 {dimension_numbers = #tpu.dot_dimension_numbers<[1], [0], [0], [1], [0, 0, 1, 1], [], []>} : vector<8x8xbf16>, vector<8x8xbf16>, vector<8x8xf32> -> vector<8x8xf32>
    %cst_31 = arith.constant dense<0xFF800000> : vector<8xf32>
    %56 = vector.multi_reduction <maximumf>, %55, %cst_31 [1] : vector<8x8xf32> to vector<8xf32>
    %57 = vector.shape_cast %56 : vector<8xf32> to vector<8x1xf32>
    %58 = vector.broadcast %57 : vector<8x1xf32> to vector<8x8xf32>
    %59 = arith.subf %55, %58 : vector<8x8xf32>
    %60 = math.exp %59 : vector<8x8xf32>
    %cst_32 = arith.constant dense<0.000000e+00> : vector<8xf32>
    %61 = vector.multi_reduction <add>, %60, %cst_32 [1] : vector<8x8xf32> to vector<8xf32>
    %62 = vector.shape_cast %61 : vector<8xf32> to vector<8x1xf32>
    %63 = tpu.reciprocal %62 {approx = true} : vector<8x1xf32> -> vector<8x1xf32>
    %64 = vector.broadcast %63 : vector<8x1xf32> to vector<8x8xf32>
    %65 = arith.mulf %60, %64 : vector<8x8xf32>
    %66 = arith.truncf %65 : vector<8x8xf32> to vector<8x8xbf16>
    %cst_33 = arith.constant dense<0.000000e+00> : vector<8x8xf32>
    %67 = tpu.matmul %66, %53, %cst_33 {dimension_numbers = #tpu.dot_dimension_numbers<[1], [0], [0], [1], [0, 0, 1, 1], [], []>} : vector<8x8xbf16>, vector<8x8xbf16>, vector<8x8xf32> -> vector<8x8xf32>
    %68 = arith.truncf %67 : vector<8x8xf32> to vector<8x8xbf16>
    %c8 = arith.constant 8 : index
    %c0_34 = arith.constant 0 : index
    %69 = vector.load %arg10[%c8, %c0_34] : memref<32x32xbf16, #tpu.memory_space<vmem>>, vector<8x32xbf16>
    %cst_35 = arith.constant dense<0.000000e+00> : vector<8x32xf32>
    %70 = tpu.matmul %68, %69, %cst_35 {dimension_numbers = #tpu.dot_dimension_numbers<[1], [0], [0], [1], [0, 0, 1, 1], [], []>} : vector<8x8xbf16>, vector<8x32xbf16>, vector<8x32xf32> -> vector<8x32xf32>
    %71 = arith.addf %50, %70 : vector<8x32xf32>
    %72 = vector.extract_strided_slice %23 {offsets = [0, 16], sizes = [8, 8], strides = [1, 1]} : vector<8x32xbf16> to vector<8x8xbf16>
    %73 = vector.extract_strided_slice %24 {offsets = [0, 16], sizes = [8, 8], strides = [1, 1]} : vector<8x32xbf16> to vector<8x8xbf16>
    %74 = vector.extract_strided_slice %25 {offsets = [0, 16], sizes = [8, 8], strides = [1, 1]} : vector<8x32xbf16> to vector<8x8xbf16>
    %75 = tpu.transpose %73, [1, 0] : vector<8x8xbf16> -> vector<8x8xbf16>
    %cst_36 = arith.constant dense<0.000000e+00> : vector<8x8xf32>
    %76 = tpu.matmul %72, %75, %cst_36 {dimension_numbers = #tpu.dot_dimension_numbers<[1], [0], [0], [1], [0, 0, 1, 1], [], []>} : vector<8x8xbf16>, vector<8x8xbf16>, vector<8x8xf32> -> vector<8x8xf32>
    %cst_37 = arith.constant dense<0xFF800000> : vector<8xf32>
    %77 = vector.multi_reduction <maximumf>, %76, %cst_37 [1] : vector<8x8xf32> to vector<8xf32>
    %78 = vector.shape_cast %77 : vector<8xf32> to vector<8x1xf32>
    %79 = vector.broadcast %78 : vector<8x1xf32> to vector<8x8xf32>
    %80 = arith.subf %76, %79 : vector<8x8xf32>
    %81 = math.exp %80 : vector<8x8xf32>
    %cst_38 = arith.constant dense<0.000000e+00> : vector<8xf32>
    %82 = vector.multi_reduction <add>, %81, %cst_38 [1] : vector<8x8xf32> to vector<8xf32>
    %83 = vector.shape_cast %82 : vector<8xf32> to vector<8x1xf32>
    %84 = tpu.reciprocal %83 {approx = true} : vector<8x1xf32> -> vector<8x1xf32>
    %85 = vector.broadcast %84 : vector<8x1xf32> to vector<8x8xf32>
    %86 = arith.mulf %81, %85 : vector<8x8xf32>
    %87 = arith.truncf %86 : vector<8x8xf32> to vector<8x8xbf16>
    %cst_39 = arith.constant dense<0.000000e+00> : vector<8x8xf32>
    %88 = tpu.matmul %87, %74, %cst_39 {dimension_numbers = #tpu.dot_dimension_numbers<[1], [0], [0], [1], [0, 0, 1, 1], [], []>} : vector<8x8xbf16>, vector<8x8xbf16>, vector<8x8xf32> -> vector<8x8xf32>
    %89 = arith.truncf %88 : vector<8x8xf32> to vector<8x8xbf16>
    %c16 = arith.constant 16 : index
    %c0_40 = arith.constant 0 : index
    %90 = vector.load %arg10[%c16, %c0_40] : memref<32x32xbf16, #tpu.memory_space<vmem>>, vector<8x32xbf16>
    %cst_41 = arith.constant dense<0.000000e+00> : vector<8x32xf32>
    %91 = tpu.matmul %89, %90, %cst_41 {dimension_numbers = #tpu.dot_dimension_numbers<[1], [0], [0], [1], [0, 0, 1, 1], [], []>} : vector<8x8xbf16>, vector<8x32xbf16>, vector<8x32xf32> -> vector<8x32xf32>
    %92 = arith.addf %71, %91 : vector<8x32xf32>
    %93 = vector.extract_strided_slice %23 {offsets = [0, 24], sizes = [8, 8], strides = [1, 1]} : vector<8x32xbf16> to vector<8x8xbf16>
    %94 = vector.extract_strided_slice %24 {offsets = [0, 24], sizes = [8, 8], strides = [1, 1]} : vector<8x32xbf16> to vector<8x8xbf16>
    %95 = vector.extract_strided_slice %25 {offsets = [0, 24], sizes = [8, 8], strides = [1, 1]} : vector<8x32xbf16> to vector<8x8xbf16>
    %96 = tpu.transpose %94, [1, 0] : vector<8x8xbf16> -> vector<8x8xbf16>
    %cst_42 = arith.constant dense<0.000000e+00> : vector<8x8xf32>
    %97 = tpu.matmul %93, %96, %cst_42 {dimension_numbers = #tpu.dot_dimension_numbers<[1], [0], [0], [1], [0, 0, 1, 1], [], []>} : vector<8x8xbf16>, vector<8x8xbf16>, vector<8x8xf32> -> vector<8x8xf32>
    %cst_43 = arith.constant dense<0xFF800000> : vector<8xf32>
    %98 = vector.multi_reduction <maximumf>, %97, %cst_43 [1] : vector<8x8xf32> to vector<8xf32>
    %99 = vector.shape_cast %98 : vector<8xf32> to vector<8x1xf32>
    %100 = vector.broadcast %99 : vector<8x1xf32> to vector<8x8xf32>
    %101 = arith.subf %97, %100 : vector<8x8xf32>
    %102 = math.exp %101 : vector<8x8xf32>
    %cst_44 = arith.constant dense<0.000000e+00> : vector<8xf32>
    %103 = vector.multi_reduction <add>, %102, %cst_44 [1] : vector<8x8xf32> to vector<8xf32>
    %104 = vector.shape_cast %103 : vector<8xf32> to vector<8x1xf32>
    %105 = tpu.reciprocal %104 {approx = true} : vector<8x1xf32> -> vector<8x1xf32>
    %106 = vector.broadcast %105 : vector<8x1xf32> to vector<8x8xf32>
    %107 = arith.mulf %102, %106 : vector<8x8xf32>
    %108 = arith.truncf %107 : vector<8x8xf32> to vector<8x8xbf16>
    %cst_45 = arith.constant dense<0.000000e+00> : vector<8x8xf32>
    %109 = tpu.matmul %108, %95, %cst_45 {dimension_numbers = #tpu.dot_dimension_numbers<[1], [0], [0], [1], [0, 0, 1, 1], [], []>} : vector<8x8xbf16>, vector<8x8xbf16>, vector<8x8xf32> -> vector<8x8xf32>
    %110 = arith.truncf %109 : vector<8x8xf32> to vector<8x8xbf16>
    %c24 = arith.constant 24 : index
    %c0_46 = arith.constant 0 : index
    %111 = vector.load %arg10[%c24, %c0_46] : memref<32x32xbf16, #tpu.memory_space<vmem>>, vector<8x32xbf16>
    %cst_47 = arith.constant dense<0.000000e+00> : vector<8x32xf32>
    %112 = tpu.matmul %110, %111, %cst_47 {dimension_numbers = #tpu.dot_dimension_numbers<[1], [0], [0], [1], [0, 0, 1, 1], [], []>} : vector<8x8xbf16>, vector<8x32xbf16>, vector<8x32xf32> -> vector<8x32xf32>
    %113 = arith.addf %92, %112 : vector<8x32xf32>
    %114 = arith.addf %1, %113 : vector<8x32xf32>
    %c0_48 = arith.constant 0 : index
    %c0_49 = arith.constant 0 : index
    %115 = vector.load %arg12[%c0_48, %c0_49] : memref<1x32xf32, #tpu.memory_space<vmem>>, vector<1x32xf32>
    %c0_50 = arith.constant 0 : index
    %c0_51 = arith.constant 0 : index
    %116 = vector.load %arg13[%c0_50, %c0_51] : memref<1x32xf32, #tpu.memory_space<vmem>>, vector<1x32xf32>
    %cst_52 = arith.constant dense<0.000000e+00> : vector<8xf32>
    %117 = vector.multi_reduction <add>, %114, %cst_52 [1] : vector<8x32xf32> to vector<8xf32>
    %118 = vector.shape_cast %117 : vector<8xf32> to vector<8x1xf32>
    %119 = arith.mulf %114, %114 : vector<8x32xf32>
    %cst_53 = arith.constant dense<0.000000e+00> : vector<8xf32>
    %120 = vector.multi_reduction <add>, %119, %cst_53 [1] : vector<8x32xf32> to vector<8xf32>
    %121 = vector.shape_cast %120 : vector<8xf32> to vector<8x1xf32>
    %cst_54 = arith.constant 3.125000e-02 : f32
    %122 = vector.broadcast %cst_54 : f32 to vector<8x1xf32>
    %123 = arith.mulf %118, %122 : vector<8x1xf32>
    %cst_55 = arith.constant 3.125000e-02 : f32
    %124 = vector.broadcast %cst_55 : f32 to vector<8x1xf32>
    %125 = arith.mulf %121, %124 : vector<8x1xf32>
    %126 = arith.mulf %123, %123 : vector<8x1xf32>
    %127 = arith.subf %125, %126 : vector<8x1xf32>
    %cst_56 = arith.constant 9.99999974E-6 : f32
    %128 = vector.broadcast %cst_56 : f32 to vector<8x1xf32>
    %129 = arith.addf %127, %128 : vector<8x1xf32>
    %130 = math.rsqrt %129 : vector<8x1xf32>
    %131 = vector.broadcast %123 : vector<8x1xf32> to vector<8x32xf32>
    %132 = arith.subf %114, %131 : vector<8x32xf32>
    %133 = vector.broadcast %130 : vector<8x1xf32> to vector<8x32xf32>
    %134 = arith.mulf %132, %133 : vector<8x32xf32>
    %135 = vector.broadcast %115 : vector<1x32xf32> to vector<8x32xf32>
    %136 = arith.mulf %134, %135 : vector<8x32xf32>
    %137 = vector.broadcast %116 : vector<1x32xf32> to vector<8x32xf32>
    %138 = arith.addf %136, %137 : vector<8x32xf32>
    %139 = arith.truncf %138 : vector<8x32xf32> to vector<8x32xbf16>
    %c0_57 = arith.constant 0 : index
    %c0_58 = arith.constant 0 : index
    %140 = vector.load %arg14[%c0_57, %c0_58] : memref<32x64xbf16, #tpu.memory_space<vmem>>, vector<32x64xbf16>
    %cst_59 = arith.constant dense<0.000000e+00> : vector<8x64xf32>
    %141 = tpu.matmul %139, %140, %cst_59 {dimension_numbers = #tpu.dot_dimension_numbers<[1], [0], [0], [1], [0, 0, 1, 1], [], []>} : vector<8x32xbf16>, vector<32x64xbf16>, vector<8x64xf32> -> vector<8x64xf32>
    %c0_60 = arith.constant 0 : index
    %c0_61 = arith.constant 0 : index
    %142 = vector.load %arg15[%c0_60, %c0_61] : memref<1x64xf32, #tpu.memory_space<vmem>>, vector<1x64xf32>
    %143 = vector.broadcast %142 : vector<1x64xf32> to vector<8x64xf32>
    %144 = arith.addf %141, %143 : vector<8x64xf32>
    %cst_62 = arith.constant 0.000000e+00 : f32
    %145 = vector.broadcast %cst_62 : f32 to vector<8x64xf32>
    %146 = arith.maximumf %144, %145 : vector<8x64xf32>
    %147 = arith.truncf %146 : vector<8x64xf32> to vector<8x64xbf16>
    %c0_63 = arith.constant 0 : index
    %c0_64 = arith.constant 0 : index
    %148 = vector.load %arg16[%c0_63, %c0_64] : memref<64x32xbf16, #tpu.memory_space<vmem>>, vector<64x32xbf16>
    %cst_65 = arith.constant dense<0.000000e+00> : vector<8x32xf32>
    %149 = tpu.matmul %147, %148, %cst_65 {dimension_numbers = #tpu.dot_dimension_numbers<[1], [0], [0], [1], [0, 0, 1, 1], [], []>} : vector<8x64xbf16>, vector<64x32xbf16>, vector<8x32xf32> -> vector<8x32xf32>
    %c0_66 = arith.constant 0 : index
    %c0_67 = arith.constant 0 : index
    %150 = vector.load %arg17[%c0_66, %c0_67] : memref<1x32xf32, #tpu.memory_space<vmem>>, vector<1x32xf32>
    %151 = vector.broadcast %150 : vector<1x32xf32> to vector<8x32xf32>
    %152 = arith.addf %149, %151 : vector<8x32xf32>
    %153 = arith.addf %138, %152 : vector<8x32xf32>
    %c0_68 = arith.constant 0 : index
    %c0_69 = arith.constant 0 : index
    %154 = vector.load %arg18[%c0_68, %c0_69] : memref<1x32xf32, #tpu.memory_space<vmem>>, vector<1x32xf32>
    %c0_70 = arith.constant 0 : index
    %c0_71 = arith.constant 0 : index
    %155 = vector.load %arg19[%c0_70, %c0_71] : memref<1x32xf32, #tpu.memory_space<vmem>>, vector<1x32xf32>
    %cst_72 = arith.constant dense<0.000000e+00> : vector<8xf32>
    %156 = vector.multi_reduction <add>, %153, %cst_72 [1] : vector<8x32xf32> to vector<8xf32>
    %157 = vector.shape_cast %156 : vector<8xf32> to vector<8x1xf32>
    %158 = arith.mulf %153, %153 : vector<8x32xf32>
    %cst_73 = arith.constant dense<0.000000e+00> : vector<8xf32>
    %159 = vector.multi_reduction <add>, %158, %cst_73 [1] : vector<8x32xf32> to vector<8xf32>
    %160 = vector.shape_cast %159 : vector<8xf32> to vector<8x1xf32>
    %cst_74 = arith.constant 3.125000e-02 : f32
    %161 = vector.broadcast %cst_74 : f32 to vector<8x1xf32>
    %162 = arith.mulf %157, %161 : vector<8x1xf32>
    %cst_75 = arith.constant 3.125000e-02 : f32
    %163 = vector.broadcast %cst_75 : f32 to vector<8x1xf32>
    %164 = arith.mulf %160, %163 : vector<8x1xf32>
    %165 = arith.mulf %162, %162 : vector<8x1xf32>
    %166 = arith.subf %164, %165 : vector<8x1xf32>
    %cst_76 = arith.constant 9.99999974E-6 : f32
    %167 = vector.broadcast %cst_76 : f32 to vector<8x1xf32>
    %168 = arith.addf %166, %167 : vector<8x1xf32>
    %169 = math.rsqrt %168 : vector<8x1xf32>
    %170 = vector.broadcast %162 : vector<8x1xf32> to vector<8x32xf32>
    %171 = arith.subf %153, %170 : vector<8x32xf32>
    %172 = vector.broadcast %169 : vector<8x1xf32> to vector<8x32xf32>
    %173 = arith.mulf %171, %172 : vector<8x32xf32>
    %174 = vector.broadcast %154 : vector<1x32xf32> to vector<8x32xf32>
    %175 = arith.mulf %173, %174 : vector<8x32xf32>
    %176 = vector.broadcast %155 : vector<1x32xf32> to vector<8x32xf32>
    %177 = arith.addf %175, %176 : vector<8x32xf32>
    %c0_77 = arith.constant 0 : index
    %c0_78 = arith.constant 0 : index
    %c0_79 = arith.constant 0 : index
    %178 = vector.load %arg20[%c0_77, %c0_78, %c0_79] : memref<1x8x32xf32, #tpu.memory_space<vmem>>, vector<1x8x32xf32>
    %179 = vector.shape_cast %178 : vector<1x8x32xf32> to vector<8x32xf32>
    %180 = vector.shape_cast %177 : vector<8x32xf32> to vector<1x8x32xf32>
    tpu.vector_store %arg20[%c0_77, %c0_78, %c0_79], %180 {strides = array<i32>} : memref<1x8x32xf32, #tpu.memory_space<vmem>>, vector<1x8x32xf32>,
    return
  }
  func.func @transform_0(%arg0: i32, %arg1: i32) -> (i32, i32, i32) {
    %c0_i32 = arith.constant 0 : i32
    %c0_i32_0 = arith.constant 0 : i32
    return %arg0, %arg1, %c0_i32 : i32, i32, i32
  }
  func.func @transform_1(%arg0: i32, %arg1: i32) -> (i32, i32, i32) {
    %c0_i32 = arith.constant 0 : i32
    %c0_i32_0 = arith.constant 0 : i32
    %c0_i32_1 = arith.constant 0 : i32
    return %arg0, %c0_i32, %c0_i32_0 : i32, i32, i32
  }
  func.func @transform_2(%arg0: i32, %arg1: i32) -> (i32, i32) {
    %c0_i32 = arith.constant 0 : i32
    %c0_i32_0 = arith.constant 0 : i32
    %c0_i32_1 = arith.constant 0 : i32
    return %c0_i32, %c0_i32_0 : i32, i32
  }
  func.func @transform_3(%arg0: i32, %arg1: i32) -> (i32, i32) {
    %c0_i32 = arith.constant 0 : i32
    %c0_i32_0 = arith.constant 0 : i32
    %c0_i32_1 = arith.constant 0 : i32
    return %c0_i32, %c0_i32_0 : i32, i32
  }
  func.func @transform_4(%arg0: i32, %arg1: i32) -> (i32, i32) {
    %c0_i32 = arith.constant 0 : i32
    %c0_i32_0 = arith.constant 0 : i32
    %c0_i32_1 = arith.constant 0 : i32
    return %c0_i32, %c0_i32_0 : i32, i32
  }
  func.func @transform_5(%arg0: i32, %arg1: i32) -> (i32, i32) {
    %c0_i32 = arith.constant 0 : i32
    %c0_i32_0 = arith.constant 0 : i32
    %c0_i32_1 = arith.constant 0 : i32
    return %c0_i32, %c0_i32_0 : i32, i32
  }
  func.func @transform_6(%arg0: i32, %arg1: i32) -> (i32, i32) {
    %c0_i32 = arith.constant 0 : i32
    %c0_i32_0 = arith.constant 0 : i32
    %c0_i32_1 = arith.constant 0 : i32
    return %c0_i32, %c0_i32_0 : i32, i32
  }
  func.func @transform_7(%arg0: i32, %arg1: i32) -> (i32, i32) {
    %c0_i32 = arith.constant 0 : i32
    %c0_i32_0 = arith.constant 0 : i32
    %c0_i32_1 = arith.constant 0 : i32
    return %c0_i32, %c0_i32_0 : i32, i32
  }
  func.func @transform_8(%arg0: i32, %arg1: i32) -> (i32, i32) {
    %c0_i32 = arith.constant 0 : i32
    %c0_i32_0 = arith.constant 0 : i32
    %c0_i32_1 = arith.constant 0 : i32
    return %c0_i32, %c0_i32_0 : i32, i32
  }
  func.func @transform_9(%arg0: i32, %arg1: i32) -> (i32, i32) {
    %c0_i32 = arith.constant 0 : i32
    %c0_i32_0 = arith.constant 0 : i32
    %c0_i32_1 = arith.constant 0 : i32
    return %c0_i32, %c0_i32_0 : i32, i32
  }
  func.func @transform_10(%arg0: i32, %arg1: i32) -> (i32, i32) {
    %c0_i32 = arith.constant 0 : i32
    %c0_i32_0 = arith.constant 0 : i32
    %c0_i32_1 = arith.constant 0 : i32
    return %c0_i32, %c0_i32_0 : i32, i32
  }
  func.func @transform_11(%arg0: i32, %arg1: i32) -> (i32, i32) {
    %c0_i32 = arith.constant 0 : i32
    %c0_i32_0 = arith.constant 0 : i32
    %c0_i32_1 = arith.constant 0 : i32
    return %c0_i32, %c0_i32_0 : i32, i32
  }
  func.func @transform_12(%arg0: i32, %arg1: i32) -> (i32, i32) {
    %c0_i32 = arith.constant 0 : i32
    %c0_i32_0 = arith.constant 0 : i32
    %c0_i32_1 = arith.constant 0 : i32
    return %c0_i32, %c0_i32_0 : i32, i32
  }
  func.func @transform_13(%arg0: i32, %arg1: i32) -> (i32, i32) {
    %c0_i32 = arith.constant 0 : i32
    %c0_i32_0 = arith.constant 0 : i32
    %c0_i32_1 = arith.constant 0 : i32
    return %c0_i32, %c0_i32_0 : i32, i32
  }
  func.func @transform_14(%arg0: i32, %arg1: i32) -> (i32, i32) {
    %c0_i32 = arith.constant 0 : i32
    %c0_i32_0 = arith.constant 0 : i32
    %c0_i32_1 = arith.constant 0 : i32
    return %c0_i32, %c0_i32_0 : i32, i32
  }
  func.func @transform_15(%arg0: i32, %arg1: i32) -> (i32, i32) {
    %c0_i32 = arith.constant 0 : i32
    %c0_i32_0 = arith.constant 0 : i32
    %c0_i32_1 = arith.constant 0 : i32
    return %c0_i32, %c0_i32_0 : i32, i32
  }
  func.func @transform_16(%arg0: i32, %arg1: i32) -> (i32, i32) {
    %c0_i32 = arith.constant 0 : i32
    %c0_i32_0 = arith.constant 0 : i32
    %c0_i32_1 = arith.constant 0 : i32
    return %c0_i32, %c0_i32_0 : i32, i32
  }
  func.func @transform_17(%arg0: i32, %arg1: i32) -> (i32, i32) {
    %c0_i32 = arith.constant 0 : i32
    %c0_i32_0 = arith.constant 0 : i32
    %c0_i32_1 = arith.constant 0 : i32
    return %c0_i32, %c0_i32_0 : i32, i32
  }
  func.func @transform_18(%arg0: i32, %arg1: i32) -> (i32, i32, i32) {
    %c0_i32 = arith.constant 0 : i32
    %c0_i32_0 = arith.constant 0 : i32
    return %arg0, %arg1, %c0_i32 : i32, i32, i32
  }
}

</mosaic_0001>

<bundles_post_ra>
// kernel: tpu_custom_call.1
= control target key start
LH: loop header
LB: loop body
LE: loop exit
PB: predicated region body
PF: predicated region fallthrough
CT: control target
= control target key end

     0   :  { %s3031_s0 = inlined_call_operand.vmem [shape: f32[2,8,32], index: 0, kind: input, shape index: {}]   ;;  %s3032_s1 = inlined_call_operand.vmem [shape: f32[2,8,32], index: 1, kind: input, shape index: {}]   ;;  %s3033_s2 = inlined_call_operand.vmem [shape: bf16[32,32], index: 2, kind: input, shape index: {}]   ;;  %s3034_s3 = inlined_call_operand.vmem [shape: f32[1,32], index: 3, kind: input, shape index: {}]   ;;  %s3035_s4 = inlined_call_operand.hbm [shape: bf16[32,32], index: 4, kind: input, shape index: {}]   ;;  %s3036_s5 = inlined_call_operand.vmem [shape: f32[1,32], index: 5, kind: input, shape index: {}]   ;;  %s3037_s6 = inlined_call_operand.hbm [shape: bf16[32,32], index: 6, kind: input, shape index: {}]   ;;  %s3038_s7 = inlined_call_operand.hbm [shape: f32[1,32], index: 7, kind: input, shape index: {}]   ;;  %s3039_s8 = inlined_call_operand.hbm [shape: bf16[32,32], index: 8, kind: input, shape index: {}]   ;;  %s3040_s9 = inlined_call_operand.hbm [shape: f32[1,32], index: 9, kind: input, shape index: {}]   ;;  %s3041_s10 = inlined_call_operand.vmem [shape: f32[1,32], index: 10, kind: input, shape index: {}]   ;;  %s3042_s11 = inlined_call_operand.vmem [shape: f32[1,32], index: 11, kind: input, shape index: {}]   ;;  %s3043_s12 = inlined_call_operand.vmem [shape: bf16[32,64], index: 12, kind: input, shape index: {}]   ;;  %s3044_s13 = inlined_call_operand.vmem [shape: f32[1,64], index: 13, kind: input, shape index: {}]   ;;  %s3045_s14 = inlined_call_operand.vmem [shape: bf16[64,32], index: 14, kind: input, shape index: {}]   ;;  %s3046_s15 = inlined_call_operand.vmem [shape: f32[1,32], index: 15, kind: input, shape index: {}]   ;;  %s3047_s16 = inlined_call_operand.vmem [shape: f32[1,32], index: 16, kind: input, shape index: {}]   ;;  %s3048_s17 = inlined_call_operand.vmem [shape: f32[1,32], index: 17, kind: input, shape index: {}]   ;;  %s3049_s18 = inlined_call_operand.hbm [shape: f32[2,8,32], index: 18, kind: output, shape index: {}]  }
   0x1   :  { %3066 = sst [smem:[#allocation25_spill]] %s3031_s0 }
   0x2   :  { %3067 = sst [smem:[#allocation26_spill]] %s3032_s1 }
   0x3   :  { %3068 = sst [smem:[#allocation27_spill]] %s3033_s2 }
   0x4   :  { %3069 = sst [smem:[#allocation28_spill]] %s3037_s6 }
   0x5   :  { %3070 = sst [smem:[#allocation29_spill]] %s3046_s15 }
   0x6   :  { %3071 = sst [smem:[#allocation30_spill]] %s3047_s16 }
   0x7   :  { %3072 = sst [smem:[#allocation31_spill]] %s3048_s17 }
   0x8   :  { %3073 = sst [smem:[#allocation32_spill]] %s3049_s18 }
   0x9   :  { %23 = vsyncpa [#allocation3], 0 }
   0xa   :  { %24 = vsyncpa [#allocation6], 0 }
   0xb   :  { %25 = vsyncpa [#allocation9], 0 }
   0xc   :  { %26 = vsyncpa [#allocation4], 0 }
   0xd   :  { %28 = vsyncpa [#allocation4 + $0x1], 0  ;;  %s2598_s27 = smov 0   ;;  %s2600_s28 = smov 0  }
   0xe   :  { %s2602_s29 = smov 0   ;;  %s2604_s30 = smov 0  }
   0xf   :  { %s2606_s0 = smov 0   ;;  %s2608_s19 = smov 0  }
  0x10 LB: > { %3074 = sst [smem:[#allocation16_spill]] %s2468_s27  ;;  %s1895_s1 = sadd.s32 4294967295, %s2488_s19   ;;  %s2488_s19 = sphi %s2608_s19, %s34_s19   ;;  %s2484_s0 = sphi %s2606_s0, %s3111_s0   ;;  %s2480_s30 = sphi %s2604_s30, %s3110_s30   ;;  %s2476_s29 = sphi %s2602_s29, %s3109_s29   ;;  %s2472_s28 = sphi %s2600_s28, %s3108_s28   ;;  %s2468_s27 = sphi %s2598_s27, %s3107_s27  }
  0x11   : > { %3075 = sst [smem:[#allocation17_spill]] %s2472_s28  ;;  %s1896_s20 = sadd.s32 4294967294, %s2488_s19  }
  0x12   : > { %3076 = sst [smem:[#allocation18_spill]] %s2476_s29  ;;  %s46_s21 = sadd.s32 1, %s2484_s0 }
  0x13   : > { %3077 = sst [smem:[#allocation19_spill]] %s2484_s0  ;;  %s445_s22 = sadd.s32 1, %s2476_s29 }
  0x14   : > { %3078 = sst [smem:[#allocation20_spill]] %s2488_s19  ;;  %p48_p0 = scmp.ge.s32.totalorder %s46_s21, 2 }
  0x15   : > { %p455_p1 = scmp.ne.s32.totalorder %s2476_s29, %s2472_s28  ;;  %p456_p2 = scmp.eq.s32.totalorder %s1895_s1, 1 }
  0x16   : > { %p461_p3 = scmp.ne.s32.totalorder %s2472_s28, %s2468_s27  ;;  %s3113_s21 = smov (%p48_p0, %s46_s21), 0 }
  0x17   : > { %3079 = sst [smem:[#allocation21_spill]] %s3113_s21  ;;  %p2638_p4 = por %p456_p2, %p455_p1 }
  0x18   : > { %p462_p5 = scmp.eq.s32.totalorder %s1896_s20, 1  ;;  %s440_s23 = ssub.s32 %s2484_s0, %s3113_s21 }
  0x19   : > { %s3080_s2 = scalar_select %p2638_p4, 1, 0 }
  0x1a   : > { %p1897_p6 = scmp.ge.s32.totalorder %s2488_s19, 1  ;;  %p443_p7 = scmp.eq.s32.totalorder %s440_s23, 0 }
  0x1b   : > { %3081 = sst [smem:[#allocation22_spill]] %s3080_s2  ;;  %p2645_p8 = por %p462_p5, %p461_p3 }
  0x1c   : > { %p469_p9 = scmp.lt.s32.totalorder %s2488_s19, 3  ;;  %p2657_p11 = scmp.eq.s32.totalorder %s1895_s1, 0 }
  0x1d   : > { %s3082_s24 = scalar_select %p2645_p8, 1, 0 }
  0x1e   : > { %s2651_s25 = scalar_select %p443_p7, %s2476_s29, %s445_s22  }
  0x1f   : > { %3083 = sst [smem:[#allocation23_spill]] %s3082_s24  ;;  %p2653_p10 = pnand %p1897_p6, %p469_p9 }
  0x20   : > { %3084 = sst [smem:[#allocation24_spill]] %s2651_s25  ;;  %s2490_s20 = smov [#allocation5]  }
  0x21   : > { %s3085_s26 = scalar_select %p2653_p10, 1, 0 }
  0x22   : > { %s3086_s27 = scalar_select %p2657_p11, 1, 0 }
  0x23   : > { %p2135_p12 = pneg %p2653_p10  ;;  %s503_s23 = sshll.u32 %s2490_s20, 4  ;;  %s504_s23 = int_to_ptr.vmem [resolvable:$true] %s503_s23 }
  0x24   : > { %s2491_s22 = smov [#allocation8]   ;;  %s3088_s6 = sld [smem:[#allocation28_spill]] }
  0x25   : > { %p2665_p13 = pnand %p2657_p11, %p2135_p12  ;;  %s527_s0 = sshll.u32 %s2491_s22, 4  ;;  %s2669_s0 = int_to_ptr.vmem [resolvable:$true] %s527_s0 }
  0x27   : > { %p2679_p1 = pneg %p2665_p13 }
  0x2a   : > { %s2258_s29 = scalar_lea.hbm %s3088_s6, 256 }
  0x2b   : > { %p2259_p0 = scmp.ne.s32.totalorder %s3088_s6, %s2258_s29  ;;  %p2265_p5 = scmp.lt.u32.totalorder %s2258_s29, %s3088_s6 }
  0x2d   : > { %p2261_p2 = pnand %p2679_p1, %p2259_p0 }
  0x2f   : > { %p2262_p3 = pneg %p2261_p2 }
  0x31   : > { %p2267_p6 = pnand %p2265_p5, %p2262_p3 }
  0x33   : > { %2270 = shalt.err (!%p2267_p6)
}
  0x34   : > { %s2271_s25 = scalar_lea.vmem %s504_s23, 256  ;;  %p2279_p8 = scmp.lt.s32.totalorder %s504_s23, %s504_s23 }
  0x35   : > { %p2272_p7 = scmp.ne.s32.totalorder %s504_s23, %s2271_s25  ;;  %p2280_p4 = scmp.lt.s32.totalorder %s2271_s25, %s2271_s25 }
  0x37   : > { %p2274_p9 = pnand %p2272_p7, %p2679_p1  ;;  %p2281_p11 = por %p2280_p4, %p2279_p8 }
  0x39   : > { %p2275_p12 = pneg %p2274_p9 }
  0x3b   : > { %p2282_p10 = pnand %p2281_p11, %p2275_p12 }
  0x3d   : > { %2285 = shalt.err (!%p2282_p10)
}
  0x3e   : > { %s2492_s19 = smov 64   ;;  %s2493_s24 = smov 4  }
  0x3f   : > { %2141 = dma.hbm_to_vmem [thread:$0]  (!%p2665_p13), %s3088_s6, 256, %s504_s23, [#allocation6], %s2492_s19, %s2492_s19, %s2493_s24  }
  0x40   : > { %s2286_s17 = scalar_lea.hbm %s3039_s8, 256 }
  0x41   : > { %p2287_p4 = scmp.ne.s32.totalorder %s3039_s8, %s2286_s17  ;;  %p2293_p11 = scmp.lt.u32.totalorder %s2286_s17, %s3039_s8 }
  0x43   : > { %p2289_p8 = pnand %p2287_p4, %p2679_p1 }
  0x45   : > { %p2290_p10 = pneg %p2289_p8 }
  0x47   : > { %p2295_p0 = pnand %p2293_p11, %p2290_p10 }
  0x49   : > { %2298 = shalt.err (!%p2295_p0)
}
  0x4a   : > { %s2299_s23 = scalar_lea.vmem %s2669_s0, 256  ;;  %p2307_p6 = scmp.lt.s32.totalorder %s2669_s0, %s2669_s0 }
  0x4b   : > { %p2300_p2 = scmp.ne.s32.totalorder %s2669_s0, %s2299_s23  ;;  %p2308_p7 = scmp.lt.s32.totalorder %s2299_s23, %s2299_s23 }
  0x4d   : > { %p2302_p3 = pnand %p2300_p2, %p2679_p1  ;;  %p2309_p9 = por %p2308_p7, %p2307_p6 }
  0x4f   : > { %p2303_p5 = pneg %p2302_p3 }
  0x51   : > { %p2310_p12 = pnand %p2309_p9, %p2303_p5 }
  0x53   : > { %2313 = shalt.err (!%p2310_p12)
}
  0x54   : > { %2147 = dma.hbm_to_vmem [thread:$0]  (!%p2665_p13), %s3039_s8, 256, %s2669_s0, [#allocation9], %s2492_s19, %s2492_s19, %s2493_s24  }
  0x55   : > { %s2494_s28 = smov [#allocation2]   ;;  %s2495_s18 = smov [#allocation7]  }
  0x56   : > { %s487_s2 = sshll.u32 %s2494_s28, 4  ;;  %s517_s29 = sshll.u32 %s2495_s18, 4  ;;  %s488_s2 = int_to_ptr.vmem [resolvable:$true] %s487_s2  ;;  %s518_s29 = int_to_ptr.vmem [resolvable:$true] %s517_s29 }
  0x57   : > { %s2314_s25 = scalar_lea.hbm %s3035_s4, 256 }
  0x58   : > { %p2315_p4 = scmp.ne.s32.totalorder %s3035_s4, %s2314_s25  ;;  %p2321_p11 = scmp.lt.u32.totalorder %s2314_s25, %s3035_s4 }
  0x5a   : > { %p2317_p8 = pnand %p2315_p4, %p2679_p1 }
  0x5c   : > { %p2318_p10 = pneg %p2317_p8 }
  0x5e   : > { %p2323_p0 = pnand %p2321_p11, %p2318_p10 }
  0x60   : > { %2326 = shalt.err (!%p2323_p0)
}
  0x61   : > { %s2327_s0 = scalar_lea.vmem %s488_s2, 256  ;;  %p2335_p6 = scmp.lt.s32.totalorder %s488_s2, %s488_s2 }
  0x62   : > { %p2328_p2 = scmp.ne.s32.totalorder %s488_s2, %s2327_s0  ;;  %p2336_p7 = scmp.lt.s32.totalorder %s2327_s0, %s2327_s0 }
  0x64   : > { %p2330_p3 = pnand %p2328_p2, %p2679_p1  ;;  %p2337_p9 = por %p2336_p7, %p2335_p6 }
  0x66   : > { %p2331_p5 = pneg %p2330_p3 }
  0x68   : > { %p2338_p12 = pnand %p2337_p9, %p2331_p5 }
  0x6a   : > { %2341 = shalt.err (!%p2338_p12)
}
  0x6b   : > { %2138 = dma.hbm_to_vmem [thread:$0]  (!%p2665_p13), %s3035_s4, 256, %s488_s2, [#allocation3], %s2492_s19, %s2492_s19, %s2493_s24  }
  0x6c   : > { %s2342_s18 = scalar_lea.hbm %s3038_s7, 16 }
  0x6d   : > { %p2343_p4 = scmp.ne.s32.totalorder %s3038_s7, %s2342_s18  ;;  %p2349_p11 = scmp.lt.u32.totalorder %s2342_s18, %s3038_s7 }
  0x6f   : > { %p2345_p8 = pnand %p2343_p4, %p2679_p1 }
  0x71   : > { %p2346_p10 = pneg %p2345_p8 }
  0x73   : > { %p2351_p0 = pnand %p2349_p11, %p2346_p10 }
  0x75   : > { %2354 = shalt.err (!%p2351_p0)
}
  0x76   : > { %s2355_s16 = scalar_lea.vmem %s518_s29, 16  ;;  %s2362_s19 = scalar_lea.vmem %s518_s29, 32 }
  0x77   : > { %p2356_p2 = scmp.ne.s32.totalorder %s518_s29, %s2355_s16  ;;  %p2363_p6 = scmp.lt.s32.totalorder %s518_s29, %s518_s29 }
  0x78   : > { %p2364_p7 = scmp.lt.s32.totalorder %s2362_s19, %s2355_s16 }
  0x79   : > { %p2358_p3 = pnand %p2356_p2, %p2679_p1 }
  0x7a   : > { %p2365_p9 = por %p2364_p7, %p2363_p6 }
  0x7b   : > { %p2359_p5 = pneg %p2358_p3 }
  0x7d   : > { %p2366_p12 = pnand %p2365_p9, %p2359_p5 }
  0x7f   : > { %2369 = shalt.err (!%p2366_p12)
}
  0x80   : > { %2144 = dma.hbm_to_vmem [thread:$0]  (!%p2665_p13), %s3038_s7, 16, %s518_s29, [#allocation6]  }
  0x81   : > { %s2496_s0 = smov [#allocation10]   ;;  %s2370_s28 = scalar_lea.hbm %s3040_s9, 16 }
  0x82   : > { %s541_s6 = sshll.u32 %s2496_s0, 4  ;;  %p2371_p4 = scmp.ne.s32.totalorder %s3040_s9, %s2370_s28  ;;  %s542_s6 = int_to_ptr.vmem [resolvable:$true] %s541_s6 }
  0x83   : > { %p2377_p11 = scmp.lt.u32.totalorder %s2370_s28, %s3040_s9 }
  0x84   : > { %p2373_p8 = pnand %p2371_p4, %p2679_p1 }
  0x86   : > { %p2374_p10 = pneg %p2373_p8 }
  0x88   : > { %p2379_p0 = pnand %p2377_p11, %p2374_p10 }
  0x8a   : > { %2382 = shalt.err (!%p2379_p0)
}
  0x8b   : > { %s2383_s29 = scalar_lea.vmem %s542_s6, 16  ;;  %s2390_s23 = scalar_lea.vmem %s542_s6, 32 }
  0x8c   : > { %p2384_p2 = scmp.ne.s32.totalorder %s542_s6, %s2383_s29  ;;  %p2391_p6 = scmp.lt.s32.totalorder %s542_s6, %s542_s6 }
  0x8d   : > { %p2392_p7 = scmp.lt.s32.totalorder %s2390_s23, %s2383_s29 }
  0x8e   : > { %p2386_p3 = pnand %p2384_p2, %p2679_p1 }
  0x8f   : > { %p2393_p9 = por %p2392_p7, %p2391_p6 }
  0x90   : > { %p2387_p5 = pneg %p2386_p3 }
  0x92   : > { %p2394_p12 = pnand %p2393_p9, %p2387_p5 }
  0x94   : > { %2397 = shalt.err (!%p2394_p12)
}
  0x95   : > { %2150 = dma.hbm_to_vmem [thread:$0]  (!%p2665_p13), %s3040_s9, 16, %s542_s6, [#allocation9]  }
  0x96   : > { %p3090_p4 = scmp.ne.s32.totalorder %s3085_s26, 0 }
  0x97   : > { %p3091_p8 = scmp.ne.s32.totalorder (!%p3090_p4), %s3086_s27, 0 }
  0x98   : > { %595 = sbr.rel (%p3090_p4) target bundleno = 3765 (0xeb5), region = 92 }
  0x9f   : > { %2451 = dma.done.wait (%p3091_p8), [#allocation3], 256  }
  0xa0   : > { %2453 = vsyncadd (%p3091_p8), [#allocation3], 4294967040 }
  0xa1   : > { %2455 = dma.done.wait (%p3091_p8), [#allocation6], 272  }
  0xa2   : > { %2457 = vsyncadd (%p3091_p8), [#allocation6], 4294967024 }
  0xa3   : > { %2459 = dma.done.wait (%p3091_p8), [#allocation9], 272  }
  0xa4   : > { %2461 = vsyncadd (%p3091_p8), [#allocation9], 4294967024  ;;  %p671_p13 = scmp.lt.s32.totalorder %s2480_s30, 1  ;;  %v2497_v0 = vmov 0.0   ;;  %vm2498_vm0 = vmmov 0   ;;  %s3092_s24 = sld [smem:[#allocation25_spill]] }
  0xa5   : > { %1997 = vmatprep.subr.bf16.mxu1 %v2497_v0  ;;  %2001 = vmatprep.mubr.msk.bf16.mxu1 %vm2498_vm0, %v2497_v0  ;;  %s3093_s15 = sld [smem:[#allocation27_spill]]  ;;  %vm710_vm1 = vcmask 261120   ;;  %v2228_v4 = vld [vmem:[#allocation2] sm:$0xff]   ;;  %s3094_s22 = sld [smem:[#allocation26_spill]]  ;;  %v2229_v6 = vld [vmem:[#allocation2 + $0x8] sm:$0xff]   ;;  %vm895_vm2 = vcmask 64512  }
  0xa6   : > { %s672_s21 = scalar_select %p671_p13, %s2480_s30, 1  ;;  %2013 = vmatprep.subr.bf16.mxu0 %v2497_v0  ;;  %2017 = vmatprep.mubr.msk.bf16.mxu0 %vm2498_vm0, %v2497_v0  ;;  %v1913_v13 = vld [vmem:[%s3034_s3] ss:$0 sm:$0xff]  ;;  %v2230_v25 = vld [vmem:[#allocation5] sm:$0xff]   ;;  %v2231_v26 = vld [vmem:[#allocation5 + $0x8] sm:$0xff]   ;;  %vm957_vm3 = vcmask 1043456  }
  0xa7   : > { %v1917_v14 = vld [vmem:[%s3036_s5] ss:$0 sm:$0xff]  ;;  %2014 = vmatpush3.bf16.msra.mxu0 %v2230_v25  ;;  %v1002_v52 = vld [vmem:[#allocation8] sm:$0xf]  ;;  %s2501_s20 = smov 104   ;;  %vm1670_vm4 = vcmask 523264  }
  0xa8   : > { %s1911_s26 = sshll.u32 %s672_s21, 3  ;;  %s2499_s21 = smov 120   ;;  %2015 = vmatprep.subr.bf16.mxu0 %v2497_v0  ;;  %v1921_v41 = vld [vmem:[#allocation7] ss:$0 sm:$0xff]  ;;  %v1007_v53 = vsel %vm957_vm3, %v1002_v52, 0 }
  0xa9   : > { %s3096_s0 = sld [smem:[#allocation17_spill]]  ;;  %s3097_s28 = sld [smem:[#allocation22_spill]] }
  0xaa   : > { %s677_s2 = scalar_lea.vmem %s3092_s24, %s1911_s26  ;;  %s3099_s23 = sld [smem:[#allocation31_spill]] }
  0xab   : > { %v2226_v1 = vld [vmem:[%s3093_s15] sm:$0xff]   ;;  %v2227_v2 = vld [vmem:[%s3093_s15 + $0x8] sm:$0xff]   ;;  %s681_s25 = scalar_lea.vmem %s3094_s22, %s1911_s26  ;;  %2016 = vmatpush3.bf16.msra.mxu0 %v2231_v26  ;;  %s2500_s26 = smov 112  }
  0xac   : > { %1998 = vmatpush3.bf16.msra.mxu1 %v2226_v1  ;;  %v2812_v3 = vld [vmem:[%s677_s2] sm:$0xff]  ;;  %2027 = vmatprep.subr.bf16.mxu0 %v2497_v0  ;;  %s3095_s2 = sld [smem:[#allocation29_spill]]  ;;  %s3098_s22 = sld [smem:[#allocation30_spill]] }
  0xad   : > { %1999 = vmatprep.subr.bf16.mxu1 %v2497_v0  ;;  %v685_v5 = vpack.c.bf16 %v2812_v3, %v2812_v3  ;;  %v684_v7 = vld [vmem:[%s681_s25] sm:$0xff]  ;;  %s1953_s16 = sshll.u32 %s2480_s30, 7  ;;  %s3100_s27 = sld [smem:[#allocation32_spill]] }
  0xae   : > { %v686_v8 = vpack.c.bf16 %v684_v7, %v684_v7  ;;  %s2502_s30 = smov [#allocation11]  }
  0xaf   : > { %s668_s6 = sand.u32 1, %s3096_s0   ;;  %p3102_p10 = scmp.ne.s32.totalorder %s3097_s28, 0 }
  0xb0   : > { %2000 = vmatpush3.bf16.msra.mxu1 %v2227_v2  ;;  %2018 = vmatmul.mubr.msk.bf16.vlgmr.msra.gmra.mrb[0].mxu0 %vm710_vm1, %v686_v8  ;;  %s1910_s17 = sshll.u32 %s668_s6, 3  ;;  %s1748_s0 = scalar_lea.sflag [#allocation4], %s668_s6 }
  0xb1   : > { %2005 = vmatprep.subr.bf16.mxu1 %v2497_v0  ;;  %2029 = vmatprep.mubr.msk.bf16.mxu0 %vm2498_vm0, %v2497_v0  ;;  %s670_s19 = scalar_lea.vmem [#allocation11], %s1910_s17  ;;  %s2402_s17 = sshll.u32 %s2502_s30, 4  ;;  %s2403_s17 = int_to_ptr.vmem [resolvable:$false] %s2402_s17 }
  0xb2   : > { %s2404_s1 = scalar_lea.vmem %s2403_s17, 256 }
  0xb3   : > { %2002 = vmatmul.mubr.msk.bf16.vlgmr.msra.gmra.mrb[0].mxu1 %vm710_vm1, %v685_v5  ;;  %s3101_s24 = smov %s3100_s27 }
  0xb4   : > { %2006 = vmatpush3.bf16.msra.mxu1 %v2228_v4  ;;  %2009 = vmatprep.mubr.msk.bf16.mxu1 %vm2498_vm0, %v2497_v0 }
  0xb5   : > { %2007 = vmatprep.subr.bf16.mxu1 %v2497_v0 }
  0xb8   : > { %2008 = vmatpush3.bf16.msra.mxu1 %v2229_v6 }
  0xb9   : > { %2021 = vmatprep.subr.bf16.mxu1 %v2497_v0 }
  0xbb   : > { %2010 = vmatmul.mubr.msk.bf16.vlgmr.msra.gmra.mrb[4].mxu1 %vm710_vm1, %v686_v8 }
  0xbc   : > { %2023 = vmatprep.mubr.msk.bf16.mxu1 %vm2498_vm0, %v2497_v0 }
 0x183   : > { %v877_v32 = vpop.f32.mrb[0].mxu0 }
 0x184   : > { %v2019_v33 = vpop.f32.mrb[1].mxu0  ;;  %v878_v42 = vadd.f32 %v1921_v41, %v877_v32  ;;  %v1925_v41 = vld [vmem:[#allocation10] ss:$0 sm:$0xff] }
 0x185   : > { %v880_v34 = vpop.f32.mrb[2].mxu0 }
 0x186   : > { %v748_v9 = vpop.f32.mrb[0].mxu1  ;;  %v2020_v35 = vpop.f32.mrb[3].mxu0  ;;  %v2857_v43 = vpack.c.bf16 %v878_v42, %v878_v42 }
 0x187   : > { %v2003_v10 = vpop.f32.mrb[1].mxu1  ;;  %v749_v15 = vadd.f32 %v1913_v13, %v748_v9  ;;  %v1164_v9 = vld [vmem:[#allocation8 + $0x4] sm:$0xf] }
 0x188   : > { %v751_v11 = vpop.f32.mrb[2].mxu1  ;;  %v959_v44 = vsel %vm957_vm3, %v2857_v43, 0  ;;  %v1169_v10 = vsel %vm957_vm3, %v1164_v9, 0 }
 0x189   : > { %v2004_v12 = vpop.f32.mrb[3].mxu1  ;;  %v883_v20 = vmul.f32 0.35355338, %v749_v15  ;;  %2028 = vmatpush3.bf16.msra.mxu0 %v959_v44 }
 0x18a   : > { %2039 = vmatprep.subr.bf16.mxu0 %v2497_v0 }
 0x18b   : > { %v2841_v24 = vpack.c.bf16 %v883_v20, %v883_v20 }
 0x18e   : > { %v814_v16 = vpop.f32.mrb[4].mxu1 }
 0x18f   : > { %v815_v17 = vadd.f32 %v1917_v14, %v814_v16  ;;  %v2011_v18 = vpop.f32.mrb[5].mxu1 }
 0x190   : > { %v817_v19 = vpop.f32.mrb[6].mxu1 }
 0x191   : > { %v2835_v21 = vpack.c.bf16 %v815_v17, %v815_v17  ;;  %v2012_v22 = vpop.f32.mrb[7].mxu1 }
 0x193   : > { %1054 = vrot.lane.b32.xlu1 %v2835_v21, %s2499_s21  ;;  %v900_v23 = vsel %vm895_vm2, %v2835_v21, 0 }
 0x194   : > { %2022 = vmatpush3.bf16.xpose.msra.mxu1 %v900_v23 }
 0x195   : > { %2033 = vmatprep.subr.bf16.mxu1 %v2497_v0 }
 0x197   : > { %1051 = vrot.lane.b32.xlu1 %v2841_v24, %s2499_s21 }
 0x19b   : > { %2024 = vmatmul.mubr.msk.bf16.vlgmr.msra.gmra.mrb[8].mxu1 %vm895_vm2, %v2841_v24 }
 0x19c   : > { %2035 = vmatprep.mubr.msk.bf16.mxu1 %vm2498_vm0, %v2497_v0  ;;  %2034 = vmatpush3.bf16.msra.mxu1 %v1007_v53 }
 0x19d   : > { %2045 = vmatprep.subr.bf16.mxu1 %v2497_v0 }
 0x205   : > { %v1055_v48 = vpop.permute.xlu1 %1054 }
 0x206   : > { %v1060_v50 = vsel %vm895_vm2, %v1055_v48, 0 }
 0x209   : > { %v1052_v51 = vpop.permute.xlu1 %1051 }
 0x26e   : > { %v936_v27 = vpop.f32.mrb[8].mxu1 }
 0x26f   : > { %v2025_v28 = vpop.f32.mrb[9].mxu1  ;;  %v942_v29 = vsel %vm895_vm2, %v936_v27, -inf }
 0x270   : > { %943 = vmax.xlane.f32.xlu0 %v942_v29  ;;  %v939_v30 = vpop.f32.mrb[10].mxu1 }
 0x271   : > { %v2026_v31 = vpop.f32.mrb[11].mxu1 }
 0x2fd   : > { %v944_v36 = vpop.xlane.xlu0 %943 }
 0x2fe   : > { %v945_v37 = vsub.f32 %v936_v27, %v944_v36 }
 0x300   : > { %v946_v38 = vmul.f32 1.442695, %v945_v37 }
 0x302   : > { %2238 = vpow2.f32 %v946_v38 }
 0x30c   : > { %v2239_v39 = vpop.eup %2238 }
 0x30d   : > { %v948_v40 = vsel %vm895_vm2, %v2239_v39, 0.0 }
 0x30e   : > { %949 = vadd.xlane.f32.xlu0 %v948_v40 }
 0x39b   : > { %v950_v45 = vpop.xlane.xlu0 %949 }
 0x39c   : > { %2240 = vrcp.f32 %v950_v45 }
 0x3a6   : > { %v2241_v46 = vpop.eup %2240 }
 0x3a7   : > { %v952_v47 = vmul.f32 %v2241_v46, %v2239_v39 }
 0x3a9   : > { %v953_v49 = vpack.c.bf16 %v952_v47, %v952_v47 }
 0x3ab   : > { %2030 = vmatmul.mubr.msk.bf16.vlgmr.msra.gmra.mrb[4].mxu0 %vm895_vm2, %v953_v49 }
 0x3ac   : > { %2040 = vmatpush3.bf16.xpose.msra.mxu0 %v1060_v50  ;;  %2041 = vmatprep.mubr.msk.bf16.mxu0 %vm2498_vm0, %v2497_v0 }
 0x3ad   : > { %2051 = vmatprep.subr.bf16.mxu0 %v2497_v0 }
 0x3b3   : > { %2042 = vmatmul.mubr.msk.bf16.vlgmr.msra.gmra.mrb[8].mxu0 %vm895_vm2, %v1052_v51 }
 0x3b4   : > { %2053 = vmatprep.mubr.msk.bf16.mxu0 %vm2498_vm0, %v2497_v0  ;;  %2052 = vmatpush3.bf16.msra.mxu0 %v1169_v10 }
 0x3b5   : > { %2063 = vmatprep.subr.bf16.mxu0 %v2497_v0 }
 0x47e   : > { %v995_v54 = vpop.f32.mrb[4].mxu0 }
 0x47f   : > { %v1001_v55 = vpack.c.bf16 %v995_v54, %v995_v54  ;;  %v2031_v56 = vpop.f32.mrb[5].mxu0 }
 0x480   : > { %v998_v57 = vpop.f32.mrb[6].mxu0 }
 0x481   : > { %v2032_v58 = vpop.f32.mrb[7].mxu0  ;;  %2036 = vmatmul.mubr.msk.bf16.vlgmr.msra.gmra.mrb[12].mxu1 %vm895_vm2, %v1001_v55 }
 0x482   : > { %2047 = vmatprep.mubr.msk.bf16.mxu1 %vm2498_vm0, %v2497_v0 }
 0x486   : > { %v1096_v59 = vpop.f32.mrb[8].mxu0 }
 0x487   : > { %v2043_v60 = vpop.f32.mrb[9].mxu0  ;;  %v1102_v61 = vsel %vm895_vm2, %v1096_v59, -inf }
 0x488   : > { %1103 = vmax.xlane.f32.xlu0 %v1102_v61  ;;  %v1099_v62 = vpop.f32.mrb[10].mxu0 }
 0x489   : > { %v2044_v63 = vpop.f32.mrb[11].mxu0 }
 0x49e   : > { %1115 = vrot.lane.b32.xlu0 %v2857_v43, %s2499_s21  ;;  %s1762_s21 = sshll.u32 %s670_s19, 4  ;;  %s2985_s21 = int_to_ptr.vmem [resolvable:$true] %s1762_s21 }
 0x49f   : > { %s2398_s18 = scalar_lea.vmem %s2985_s21, 128  ;;  %p2405_p2 = scmp.lt.s32.totalorder %s2985_s21, %s2403_s17 }
 0x4a0   : > { %p2399_p1 = scmp.ne.s32.totalorder %s2985_s21, %s2398_s18  ;;  %p2406_p3 = scmp.lt.s32.totalorder %s2404_s1, %s2398_s18 }
 0x4a2   : > { %1214 = vrot.lane.b32.xlu0 %v2835_v21, %s2500_s26  ;;  %p2400_p11 = pnand %p2399_p1, %p3102_p10  ;;  %p2407_p5 = por %p2406_p3, %p2405_p2 }
 0x4a4   : > { %p2401_p0 = pneg %p2400_p11 }
 0x4a6   : > { %1212 = vrot.lane.b32.xlu0 %v2841_v24, %s2500_s26  ;;  %p2408_p6 = pnand %p2407_p5, %p2401_p0 }
 0x515   : > { %v1104_v1 = vpop.xlane.xlu0 %1103 }
 0x516   : > { %v1105_v2 = vsub.f32 %v1096_v59, %v1104_v1 }
 0x518   : > { %v1106_v4 = vmul.f32 1.442695, %v1105_v2 }
 0x519   : > { %v1116_v5 = vpop.permute.xlu0 %1115 }
 0x51a   : > { %2242 = vpow2.f32 %v1106_v4  ;;  %v1121_v6 = vsel %vm957_vm3, %v1116_v5, 0 }
 0x51b   : > { %2046 = vmatpush3.bf16.msra.mxu1 %v1121_v6 }
 0x51c   : > { %2057 = vmatprep.subr.bf16.mxu1 %v2497_v0 }
 0x51d   : > { %v1215_v18 = vpop.permute.xlu0 %1214 }
 0x51e   : > { %v1220_v20 = vsel %vm895_vm2, %v1215_v18, 0 }
 0x521   : > { %v1213_v22 = vpop.permute.xlu0 %1212 }
 0x524   : > { %v2243_v7 = vpop.eup %2242 }
 0x525   : > { %v1108_v8 = vsel %vm895_vm2, %v2243_v7, 0.0 }
 0x526   : > { %1109 = vadd.xlane.f32.xlu1 %v1108_v8 }
 0x537   : > { %1274 = vrot.lane.b32.xlu1 %v2857_v43, %s2500_s26 }
 0x554   : > { %v1043_v11 = vpop.f32.mrb[12].mxu1 }
 0x555   : > { %v2037_v12 = vpop.f32.mrb[13].mxu1  ;;  %v1049_v42 = vadd.f32 %v1925_v41, %v1043_v11  ;;  %v1482_v11 = vld [vmem:[#allocation8 + $0xc] sm:$0xf] }
 0x556   : > { %v1046_v13 = vpop.f32.mrb[14].mxu1  ;;  %v1487_v12 = vsel %vm957_vm3, %v1482_v11, 0 }
 0x557   : > { %v2038_v14 = vpop.f32.mrb[15].mxu1 }
 0x5b3   : > { %v1110_v15 = vpop.xlane.xlu1 %1109 }
 0x5b4   : > { %2244 = vrcp.f32 %v1110_v15 }
 0x5b7   : > { %v1275_v23 = vpop.permute.xlu1 %1274 }
 0x5b8   : > { %v1280_v29 = vsel %vm957_vm3, %v1275_v23, 0 }
 0x5be   : > { %v2245_v16 = vpop.eup %2244 }
 0x5bf   : > { %v1112_v17 = vmul.f32 %v2245_v16, %v2243_v7 }
 0x5c1   : > { %v1113_v19 = vpack.c.bf16 %v1112_v17, %v1112_v17 }
 0x5c3   : > { %2048 = vmatmul.mubr.msk.bf16.vlgmr.msra.gmra.mrb[16].mxu1 %vm895_vm2, %v1113_v19 }
 0x5c4   : > { %2058 = vmatpush3.bf16.xpose.msra.mxu1 %v1220_v20  ;;  %2059 = vmatprep.mubr.msk.bf16.mxu1 %vm2498_vm0, %v2497_v0 }
 0x5c5   : > { %2069 = vmatprep.subr.bf16.mxu1 %v2497_v0 }
 0x5cb   : > { %2060 = vmatmul.mubr.msk.bf16.vlgmr.msra.gmra.mrb[20].mxu1 %vm895_vm2, %v1213_v22 }
 0x5cc   : > { %2071 = vmatprep.mubr.msk.bf16.mxu1 %vm2498_vm0, %v2497_v0 }
 0x696   : > { %v1157_v25 = vpop.f32.mrb[16].mxu1 }
 0x697   : > { %v1163_v26 = vpack.c.bf16 %v1157_v25, %v1157_v25  ;;  %v2049_v27 = vpop.f32.mrb[17].mxu1 }
 0x698   : > { %v1160_v28 = vpop.f32.mrb[18].mxu1 }
 0x699   : > { %v2050_v30 = vpop.f32.mrb[19].mxu1  ;;  %2054 = vmatmul.mubr.msk.bf16.vlgmr.msra.gmra.mrb[12].mxu0 %vm895_vm2, %v1163_v26 }
 0x69a   : > { %2064 = vmatpush3.bf16.msra.mxu0 %v1280_v29  ;;  %2065 = vmatprep.mubr.msk.bf16.mxu0 %vm2498_vm0, %v2497_v0 }
 0x69b   : > { %2075 = vmatprep.subr.bf16.mxu0 %v2497_v0 }
 0x69e   : > { %v1256_v31 = vpop.f32.mrb[20].mxu1 }
 0x69f   : > { %v2061_v32 = vpop.f32.mrb[21].mxu1  ;;  %v1262_v33 = vsel %vm895_vm2, %v1256_v31, -inf }
 0x6a0   : > { %1263 = vmax.xlane.f32.xlu0 %v1262_v33  ;;  %v1259_v34 = vpop.f32.mrb[22].mxu1 }
 0x6a1   : > { %v2062_v35 = vpop.f32.mrb[23].mxu1 }
 0x72d   : > { %v1264_v36 = vpop.xlane.xlu0 %1263 }
 0x72e   : > { %v1265_v37 = vsub.f32 %v1256_v31, %v1264_v36 }
 0x730   : > { %v1266_v38 = vmul.f32 1.442695, %v1265_v37  ;;  %v2232_v37 = vld [vmem:[%s3043_s12] sm:$0xff]  }
 0x732   : > { %2246 = vpow2.f32 %v1266_v38  ;;  %v2233_v38 = vld [vmem:[%s3043_s12 + $0x8] sm:$0xff]  }
 0x73c   : > { %v2247_v39 = vpop.eup %2246 }
 0x73d   : > { %v1268_v40 = vsel %vm895_vm2, %v2247_v39, 0.0 }
 0x73e   : > { %1269 = vadd.xlane.f32.xlu1 %v1268_v40 }
 0x74f   : > { %1373 = vrot.lane.b32.xlu1 %v2835_v21, %s2501_s20 }
 0x753   : > { %1371 = vrot.lane.b32.xlu1 %v2841_v24, %s2501_s20  ;;  %v1323_v24 = vld [vmem:[#allocation8 + $0x8] sm:$0xf] }
 0x754   : > { %v1328_v55 = vsel %vm957_vm3, %v1323_v24, 0  ;;  %v2236_v24 = vld [vmem:[%s3045_s14 + $0x10] sm:$0xff]  }
 0x755   : > { %2070 = vmatpush3.bf16.msra.mxu1 %v1328_v55  ;;  %v2237_v55 = vld [vmem:[%s3045_s14 + $0x18] sm:$0xff]  }
 0x756   : > { %2081 = vmatprep.subr.bf16.mxu1 %v2497_v0 }
 0x76c   : > { %v1205_v44 = vpop.f32.mrb[12].mxu0 }
 0x76d   : > { %v1211_v45 = vadd.f32 %v1205_v44, %v1049_v42  ;;  %v2055_v46 = vpop.f32.mrb[13].mxu0 }
 0x76e   : > { %v1208_v47 = vpop.f32.mrb[14].mxu0 }
 0x76f   : > { %v2056_v48 = vpop.f32.mrb[15].mxu0 }
 0x7cb   : > { %v1270_v49 = vpop.xlane.xlu1 %1269 }
 0x7cc   : > { %2248 = vrcp.f32 %v1270_v49 }
 0x7cf   : > { %v1374_v52 = vpop.permute.xlu1 %1373 }
 0x7d0   : > { %v1379_v54 = vsel %vm895_vm2, %v1374_v52, 0  ;;  %v1939_v52 = vld [vmem:[%s3042_s11] ss:$0 sm:$0xff] }
 0x7d3   : > { %v1372_v21 = vpop.permute.xlu1 %1371 }
 0x7d6   : > { %v2249_v50 = vpop.eup %2248 }
 0x7d7   : > { %v1272_v51 = vmul.f32 %v2249_v50, %v2247_v39  ;;  %v2235_v39 = vld [vmem:[%s3045_s14 + $0x8] sm:$0xff]   ;;  %v1938_v50 = vld [vmem:[%s3041_s10] ss:$0 sm:$0xff] }
 0x7d9   : > { %v1273_v53 = vpack.c.bf16 %v1272_v51, %v1272_v51 }
 0x7db   : > { %2066 = vmatmul.mubr.msk.bf16.vlgmr.msra.gmra.mrb[16].mxu0 %vm895_vm2, %v1273_v53 }
 0x7dc   : > { %2076 = vmatpush3.bf16.xpose.msra.mxu0 %v1379_v54  ;;  %2077 = vmatprep.mubr.msk.bf16.mxu0 %vm2498_vm0, %v2497_v0 }
 0x7dd   : > { %2087 = vmatprep.subr.bf16.mxu0 %v2497_v0 }
 0x7e3   : > { %2078 = vmatmul.mubr.msk.bf16.vlgmr.msra.gmra.mrb[20].mxu0 %vm895_vm2, %v1372_v21 }
 0x7e4   : > { %2089 = vmatprep.mubr.msk.bf16.mxu0 %vm2498_vm0, %v2497_v0  ;;  %2088 = vmatpush3.bf16.msra.mxu0 %v1487_v12 }
 0x7e5   : > { %2101 = vmatprep.subr.bf16.mxu0 %v2497_v0 }
 0x8ae   : > { %v1316_v56 = vpop.f32.mrb[16].mxu0 }
 0x8af   : > { %v1322_v57 = vpack.c.bf16 %v1316_v56, %v1316_v56  ;;  %v2067_v58 = vpop.f32.mrb[17].mxu0  ;;  %v1940_v56 = vld [vmem:[%s3044_s13] ss:$0 sm:$0xff] }
 0x8b0   : > { %v1319_v59 = vpop.f32.mrb[18].mxu0 }
 0x8b1   : > { %v2068_v60 = vpop.f32.mrb[19].mxu0  ;;  %2072 = vmatmul.mubr.msk.bf16.vlgmr.msra.gmra.mrb[24].mxu1 %vm895_vm2, %v1322_v57 }
 0x8b2   : > { %2083 = vmatprep.mubr.msk.bf16.mxu1 %vm2498_vm0, %v2497_v0 }
 0x8b6   : > { %v1415_v61 = vpop.f32.mrb[20].mxu0 }
 0x8b7   : > { %v2079_v62 = vpop.f32.mrb[21].mxu0  ;;  %v1421_v63 = vsel %vm895_vm2, %v1415_v61, -inf }
 0x8b8   : > { %1422 = vmax.xlane.f32.xlu0 %v1421_v63  ;;  %v1418_v1 = vpop.f32.mrb[22].mxu0 }
 0x8b9   : > { %v2080_v2 = vpop.f32.mrb[23].mxu0 }
 0x8ce   : > { %1433 = vrot.lane.b32.xlu0 %v2857_v43, %s2501_s20 }
 0x945   : > { %v1423_v4 = vpop.xlane.xlu0 %1422 }
 0x946   : > { %v1424_v5 = vsub.f32 %v1415_v61, %v1423_v4 }
 0x948   : > { %v1425_v6 = vmul.f32 1.442695, %v1424_v5 }
 0x949   : > { %v1434_v7 = vpop.permute.xlu0 %1433 }
 0x94a   : > { %2250 = vpow2.f32 %v1425_v6  ;;  %v1439_v8 = vsel %vm957_vm3, %v1434_v7, 0 }
 0x94b   : > { %2082 = vmatpush3.bf16.msra.mxu1 %v1439_v8 }
 0x94c   : > { %2093 = vmatprep.subr.bf16.mxu1 %v2497_v0 }
 0x954   : > { %v2251_v9 = vpop.eup %2250 }
 0x955   : > { %v1427_v10 = vsel %vm895_vm2, %v2251_v9, 0.0 }
 0x956   : > { %1428 = vadd.xlane.f32.xlu1 %v1427_v10 }
 0x984   : > { %v1364_v43 = vpop.f32.mrb[24].mxu1 }
 0x985   : > { %v1370_v13 = vadd.f32 %v1364_v43, %v1211_v45  ;;  %v2073_v14 = vpop.f32.mrb[25].mxu1 }
 0x986   : > { %v1367_v15 = vpop.f32.mrb[26].mxu1 }
 0x987   : > { %v2074_v16 = vpop.f32.mrb[27].mxu1 }
 0x9e3   : > { %v1429_v17 = vpop.xlane.xlu1 %1428 }
 0x9e4   : > { %2252 = vrcp.f32 %v1429_v17 }
 0x9ee   : > { %v2253_v18 = vpop.eup %2252 }
 0x9ef   : > { %v1431_v19 = vmul.f32 %v2253_v18, %v2251_v9 }
 0x9f1   : > { %v1432_v20 = vpack.c.bf16 %v1431_v19, %v1431_v19  ;;  %v1950_v19 = vld [vmem:[%s3098_s22] ss:$0 sm:$0xff] }
 0x9f3   : > { %2084 = vmatmul.mubr.msk.bf16.vlgmr.msra.gmra.mrb[28].mxu1 %vm895_vm2, %v1432_v20 }
 0x9f4   : > { %2097 = vmatprep.mubr.msk.bf16.mxu1 %vm2498_vm0, %v2497_v0  ;;  %2094 = vmatpush3.bf16.msra.mxu1 %v2232_v37 }
 0x9f5   : > { %2095 = vmatprep.subr.bf16.mxu1 %v2497_v0 }
 0x9f8   : > { %2096 = vmatpush3.bf16.msra.mxu1 %v2233_v38 }
 0xac6   : > { %v1475_v22 = vpop.f32.mrb[28].mxu1 }
 0xac7   : > { %v1481_v23 = vpack.c.bf16 %v1475_v22, %v1475_v22  ;;  %v2085_v25 = vpop.f32.mrb[29].mxu1  ;;  %v1951_v22 = vld [vmem:[%s3099_s23] ss:$0 sm:$0xff] }
 0xac8   : > { %v1478_v26 = vpop.f32.mrb[30].mxu1 }
 0xac9   : > { %v2086_v27 = vpop.f32.mrb[31].mxu1  ;;  %2090 = vmatmul.mubr.msk.bf16.vlgmr.msra.gmra.mrb[24].mxu0 %vm895_vm2, %v1481_v23 }
 0xaca   : > { %2109 = vmatprep.mubr.msk.bf16.mxu0 %vm2498_vm0, %v2497_v0 }
 0xb9c   : > { %v1523_v28 = vpop.f32.mrb[24].mxu0 }
 0xb9d   : > { %v1529_v29 = vadd.f32 %v1523_v28, %v1370_v13  ;;  %v2091_v30 = vpop.f32.mrb[25].mxu0 }
 0xb9e   : > { %v1526_v31 = vpop.f32.mrb[26].mxu0 }
 0xb9f   : > { %v1530_v32 = vadd.f32 %v1529_v29, %v2812_v3  ;;  %v2092_v33 = vpop.f32.mrb[27].mxu0  ;;  %v2234_v3 = vld [vmem:[%s3045_s14] sm:$0xff]  }
 0xba0   : > { %2102 = vmatpush3.bf16.msra.mxu0 %v2234_v3 }
 0xba1   : > { %v1533_v34 = vsel %vm710_vm1, %v1530_v32, 0.0  ;;  %v1536_v35 = vmul.f32 %v1530_v32, %v1530_v32  ;;  %2103 = vmatprep.subr.bf16.mxu0 %v2497_v0 }
 0xba2   : > { %1534 = vadd.xlane.f32.xlu0 %v1533_v34 }
 0xba3   : > { %v1537_v36 = vsel %vm710_vm1, %v1536_v35, 0.0 }
 0xba4   : > { %1538 = vadd.xlane.f32.xlu1 %v1537_v36  ;;  %2104 = vmatpush3.bf16.msra.mxu0 %v2235_v39 }
 0xba5   : > { %2105 = vmatprep.subr.bf16.mxu0 %v2497_v0 }
 0xba8   : > { %2106 = vmatpush3.bf16.msra.mxu0 %v2236_v24 }
 0xba9   : > { %2107 = vmatprep.subr.bf16.mxu0 %v2497_v0  ;;  %v1944_v0 = vld [vmem:[%s3095_s2] ss:$0 sm:$0xff]  ;;  %s2983_s2 = scalar_lea.hbm %s3100_s27, %s1953_s16 }
 0xbac   : > { %2108 = vmatpush3.bf16.msra.mxu0 %v2237_v55 }
 0xc2f   : > { %v1535_v40 = vpop.xlane.xlu0 %1534 }
 0xc30   : > { %v1540_v41 = vmul.f32 0.03125, %v1535_v40 }
 0xc31   : > { %v1539_v42 = vpop.xlane.xlu1 %1538 }
 0xc32   : > { %v1542_v44 = vmul.f32 %v1540_v41, %v1540_v41  ;;  %v1541_v45 = vmul.f32 0.03125, %v1539_v42  ;;  %v1546_v48 = vsub.f32 %v1530_v32, %v1540_v41 }
 0xc34   : > { %v1543_v46 = vsub.f32 %v1541_v45, %v1542_v44 }
 0xc36   : > { %v1544_v47 = vadd.f32 1e-05, %v1543_v46 }
 0xc38   : > { %2254 = vrsqrt.f32 %v1544_v47 }
 0xc42   : > { %v2255_v49 = vpop.eup %2254 }
 0xc43   : > { %v1547_v51 = vmul.f32 %v2255_v49, %v1546_v48 }
 0xc45   : > { %v1554_v53 = vmul.f32 %v1938_v50, %v1547_v51 }
 0xc47   : > { %v1561_v54 = vadd.f32 %v1939_v52, %v1554_v53 }
 0xc49   : > { %v1562_v21 = vpack.c.bf16 %v1561_v54, %v1561_v54 }
 0xc4b   : > { %2098 = vmatmul.mubr.msk.bf16.vlgmr.msra.gmra.mrb[32].mxu1 %vm710_vm1, %v1562_v21 }
 0xd1e   : > { %v1623_v57 = vpop.f32.mrb[32].mxu1 }
 0xd1f   : > { %v1624_v58 = vadd.f32 %v1940_v56, %v1623_v57  ;;  %v2099_v59 = vpop.f32.mrb[33].mxu1 }
 0xd20   : > { %v1626_v60 = vpop.f32.mrb[34].mxu1 }
 0xd21   : > { %v1629_v61 = vmax.f32 %v1624_v58, 0.0  ;;  %v2100_v62 = vpop.f32.mrb[35].mxu1 }
 0xd23   : > { %v1630_v63 = vpack.c.bf16 %v1629_v61, %v1629_v61 }
 0xd25   : > { %2110 = vmatmul.mubr.msk.bf16.vlgmr.msra.gmra.mrb[28].mxu0 %vm1670_vm4, %v1630_v63 }
 0xdf8   : > { %v1708_v1 = vpop.f32.mrb[28].mxu0 }
 0xdf9   : > { %v1709_v2 = vadd.f32 %v1944_v0, %v1708_v1  ;;  %v2111_v4 = vpop.f32.mrb[29].mxu0 }
 0xdfa   : > { %v1711_v5 = vpop.f32.mrb[30].mxu0 }
 0xdfb   : > { %v1714_v6 = vadd.f32 %v1709_v2, %v1561_v54  ;;  %v2112_v7 = vpop.f32.mrb[31].mxu0 }
 0xdfd   : > { %v1717_v8 = vsel %vm710_vm1, %v1714_v6, 0.0  ;;  %v1720_v9 = vmul.f32 %v1714_v6, %v1714_v6 }
 0xdfe   : > { %1718 = vadd.xlane.f32.xlu1 %v1717_v8 }
 0xdff   : > { %v1721_v10 = vsel %vm710_vm1, %v1720_v9, 0.0 }
 0xe02   : > { %1722 = vadd.xlane.f32.xlu1 %v1721_v10 }
 0xe8b   : > { %v1719_v11 = vpop.xlane.xlu1 %1718 }
 0xe8c   : > { %v1724_v12 = vmul.f32 0.03125, %v1719_v11 }
 0xe8e   : > { %v1726_v13 = vmul.f32 %v1724_v12, %v1724_v12  ;;  %v1730_v17 = vsub.f32 %v1714_v6, %v1724_v12 }
 0xe8f   : > { %v1723_v43 = vpop.xlane.xlu1 %1722 }
 0xe90   : > { %v1725_v14 = vmul.f32 0.03125, %v1723_v43 }
 0xe92   : > { %v1727_v15 = vsub.f32 %v1725_v14, %v1726_v13 }
 0xe94   : > { %v1728_v16 = vadd.f32 1e-05, %v1727_v15 }
 0xe96   : > { %2256 = vrsqrt.f32 %v1728_v16 }
 0xea0   : > { %v2257_v18 = vpop.eup %2256 }
 0xea1   : > { %v1731_v20 = vmul.f32 %v2257_v18, %v1730_v17 }
 0xea3   : > { %v1738_v23 = vmul.f32 %v1950_v19, %v1731_v20 }
 0xea5   : > { %v1745_v25 = vadd.f32 %v1951_v22, %v1738_v23 }
 0xea7   : > { %1746 = vst.msk [vmem:[%s670_s19] sm:$0xff] %vm710_vm1, %v1745_v25 }
 0xea8   : > { %2411 = shalt.err (!%p2408_p6)
}
 0xea9   : > { %s2412_s6 = scalar_lea.hbm %s2983_s2, 128  ;;  %s2416_s29 = scalar_lea.hbm %s3101_s24, 256 }
 0xeaa   : > { %p2413_p7 = scmp.ne.s32.totalorder %s2983_s2, %s2412_s6  ;;  %p2417_p4 = scmp.lt.u32.totalorder %s2983_s2, %s3101_s24 }
 0xeab   : > { %p2418_p8 = scmp.lt.u32.totalorder %s2416_s29, %s2412_s6  ;;  %p2420_p1 = scmp.lt.u32.totalorder %s2412_s6, %s2983_s2 }
 0xeac   : > { %p2414_p9 = pnand %p2413_p7, %p3102_p10 }
 0xead   : > { %p2419_p13 = por %p2418_p8, %p2417_p4 }
 0xeae   : > { %p2415_p12 = pneg %p2414_p9 }
 0xeaf   : > { %p2421_p11 = por %p2420_p1, %p2419_p13 }
 0xeb1   : > { %p2422_p0 = pnand %p2421_p11, %p2415_p12 }
 0xeb3   : > { %2425 = shalt.err (!%p2422_p0)
}
 0xeb4   : > { %2133 = dma.vmem_to_hbm [thread:$0]  (%p3102_p10), %s2985_s21, 128, %s2983_s2, %s1748_s0  }
 0xeb5 PF: > { %s3103_s19 = sld [smem:[#allocation20_spill]]  ;;  %s3104_s26 = sld [smem:[#allocation16_spill]] }
 0xeb6   : > { %s3105_s20 = sld [smem:[#allocation23_spill]] }
 0xebb   : > { %p2165_p2 = scmp.ge.s32.totalorder %s3103_s19, 2  ;;  %s1774_s27 = sand.u32 1, %s3104_s26  }
 0xebc   : > { %p3106_p3 = scmp.ne.s32.totalorder %s3105_s20, 0  ;;  %s1775_s18 = scalar_lea.sflag [#allocation4], %s1774_s27 }
 0xebe   : > { %p2152_p5 = pnand %p2165_p2, %p3106_p3 }
 0xec0   : > { %2463 = dma.done.wait (!%p2152_p5), %s1775_s18, 128  }
 0xec1   : > { %2465 = vsyncadd (!%p2152_p5), %s1775_s18, 4294967168  ;;  %s34_s19 = sadd.s32 1, %s3103_s19   ;;  %s3107_s27 = sld [smem:[#allocation17_spill]] }
 0xec2   : > { %p31_p6 = scmp.ge.s32.totalorder %s34_s19, 4   ;;  %s3108_s28 = sld [smem:[#allocation18_spill]] }
 0xec3   : > { %s3109_s29 = sld [smem:[#allocation24_spill]]  ;;  %s3110_s30 = sld [smem:[#allocation19_spill]] }
 0xec4   : > { %s3111_s0 = sld [smem:[#allocation21_spill]]  ;;  %33 = sbr.rel (!%p31_p6) target bundleno = 16 (0x10), region = 151 }
 0xecb   :  { %1780 = vsyncpa [#allocation3], 1 }
 0xecc   :  { %1782 = vsyncpa [#allocation3 + $0x1], 1 }
 0xecd   :  { %1783 = vsyncpa [#allocation6], 1 }
 0xece   :  { %1784 = vsyncpa [#allocation9], 1 }
 0xecf   :  { %1785 = vsyncpa [#allocation4], 1 }
 0xed0   :  { %1787 = vsyncpa [#allocation4 + $0x1], 1 }

</bundles_post_ra>
